<compile_context>
chip_gen: v7x
topology: tpu7x:2x2x1
jax: 0.10.0
libtpu: 0.0.40
codegen_flags: <defaults>
</compile_context>

<pallas_src>
import functools

import jax
import jax.numpy as jnp
from jax import lax
from jax.experimental import pallas as pl
from jax.experimental.pallas import tpu as pltpu


_LEAKY_SLOPE = 0.01      # torch F.leaky_relu default
_NEG_INF = -1e30         # bias for padded fc-output columns (softmax ignores)


def _round_up(x, m):
    return (x + m - 1) // m * m


def _leaky_relu(x, slope=_LEAKY_SLOPE):
    return jnp.where(x > 0, x, slope * x)


def _softmax_last_exact(x):
    """Last-axis softmax, exact denominator (kernel, attention softmax)."""
    x = x - jnp.max(x, axis=-1, keepdims=True)
    p = jnp.exp(x)
    return p / jnp.sum(p, axis=-1, keepdims=True)


def _softmax_last_fast(x):
    """Last-axis softmax with EUP approx reciprocal (kernel, fc softmax)."""
    x = x - jnp.max(x, axis=-1, keepdims=True)
    p = jnp.exp(x)
    return p * pl.reciprocal(jnp.sum(p, axis=-1, keepdims=True), approx=True)


def _softmax(x, axis):
    """Plain-JAX reference softmax."""
    x = x - jnp.max(x, axis=axis, keepdims=True)
    p = jnp.exp(x)
    return p / jnp.sum(p, axis=axis, keepdims=True)


# --------------------------- fused multi-head kernel ---------------------------
def multihead_gat_kernel(d_ref, w_ref,
                         a_dsrc_ref, a_wsrc_ref, a_ddst_ref, a_wdst_ref,
                         b1_ref, b2_ref, fcw_ref, fcb_ref,
                         doc_out_ref, word_out_ref,
                         pd_src_sc, pw_src_sc, pd_dst_sc, pw_dst_sc,
                         *, num_heads, apply_elu):
    """One grid step == one attention head; head-mean accumulated into outputs.

    d_ref      : (Nd, F)       VMEM bf16  doc features   (same block every head)
    w_ref      : (Nw, F)       VMEM bf16  word features  (same block every head)
    a_dsrc_ref : (H, F)        VMEM bf16  a1_src rows  (doc  src of 'include')
    a_wsrc_ref : (H, F)        VMEM bf16  a2_src rows  (word src of 'included')
    a_ddst_ref : (F, H)        VMEM bf16  a2_dst cols  (doc  dst of 'included')
    a_wdst_ref : (F, H)        VMEM bf16  a1_dst cols  (word dst of 'include')
    b1_ref     : (1, H)        VMEM f32   attn_fc_d2w bias
    b2_ref     : (1, H)        VMEM f32   attn_fc_w2d bias
    fcw_ref    : (1, F, Opad)  VMEM bf16  fc weight (per head, zero-padded)
    fcb_ref    : (1, 1, Opad)  VMEM f32   fc bias (padded cols = -1e30)
    outputs    : (Nd, Opad), (Nw, Opad) -- resident accumulators across heads
    scratch    : projections computed once at head 0
    """
    h = pl.program_id(0)

    D = d_ref[...]                                  # (Nd, F) bf16
    W = w_ref[...]                                  # (Nw, F) bf16

    # ---- hoisted attention projections: computed once at head 0 ----
    @pl.when(h == 0)
    def _():
        dn = (((1,), (1,)), ((), ()))               # contract feature dims
        # src projections, row-major (head, node): per-head use is a sublane
        # slice -> no XLU transpose, no per-head skinny matmul.
        pd_src_sc[...] = lax.dot_general(a_dsrc_ref[...], D, dn,
                                         preferred_element_type=jnp.float32)
        pw_src_sc[...] = lax.dot_general(a_wsrc_ref[...], W, dn,
                                         preferred_element_type=jnp.float32)
        # dst projections, column-major (node, head) with the edge bias folded
        # in, so the edge build needs no scalar reads.
        pd_dst_sc[...] = (jnp.dot(D, a_ddst_ref[...],
                                  preferred_element_type=jnp.float32)
                          + b2_ref[...])
        pw_dst_sc[...] = (jnp.dot(W, a_wdst_ref[...],
                                  preferred_element_type=jnp.float32)
                          + b1_ref[...])

    # ---- per-head slices of the hoisted projections ----
    sd1_row = pd_src_sc[pl.ds(h, 1), :]             # (1, Nd)  D . a1_src
    sw2_row = pw_src_sc[pl.ds(h, 1), :]             # (1, Nw)  W . a2_src
    head_sel = lax.broadcasted_iota(jnp.int32, (1, num_heads), 1) == h
    sd2b_col = jnp.sum(jnp.where(head_sel, pd_dst_sc[...], 0.0),
                       axis=1, keepdims=True)       # (Nd, 1)  D . a2_dst + b2
    sw1b_col = jnp.sum(jnp.where(head_sel, pw_dst_sc[...], 0.0),
                       axis=1, keepdims=True)       # (Nw, 1)  W . a1_dst + b1

    # ---- 'include' edges (doc -> word): softmax over docs per word ----
    # Built directly as (Nw, Nd): softmax is a lane reduction, no transpose.
    e1t = _leaky_relu(sw1b_col + sd1_row)           # (Nw, Nd)
    alpha1 = _softmax_last_exact(e1t)               # (Nw, Nd) f32
    h_word = jnp.dot(alpha1.astype(jnp.bfloat16), D,
                     preferred_element_type=jnp.float32)   # (Nw, F)

    # ---- 'included' edges (word -> doc): softmax over words per doc ----
    e2t = _leaky_relu(sd2b_col + sw2_row)           # (Nd, Nw)
    alpha2 = _softmax_last_exact(e2t)               # (Nd, Nw) f32
    h_doc = jnp.dot(alpha2.astype(jnp.bfloat16), W,
                    preferred_element_type=jnp.float32)    # (Nd, F)

    # ---- shared fc + per-node feature softmax (dropout == identity) ----
    fcw = fcw_ref[0]                                # (F, Opad) bf16
    fcb = fcb_ref[0]                                # (1, Opad) f32

    def fc_softmax(x):
        logits = jnp.dot(x.astype(jnp.bfloat16), fcw,
                         preferred_element_type=jnp.float32) + fcb
        return _softmax_last_fast(logits)

    doc_head = fc_softmax(h_doc)                    # (Nd, Opad)
    word_head = fc_softmax(h_word)                  # (Nw, Opad)

    # ---- head-sum accumulate (no zero-fill, no per-head scaling) ----
    @pl.when(h == 0)
    def _():
        doc_out_ref[...] = doc_head
        word_out_ref[...] = word_head

    @pl.when(h > 0)
    def _():
        doc_out_ref[...] += doc_head
        word_out_ref[...] += word_head

    # ---- epilogue at the last head: mean over heads (+ fused elu) ----
    @pl.when(h == num_heads - 1)
    def _():
        inv_h = 1.0 / float(num_heads)
        d_mean = doc_out_ref[...] * inv_h
        w_mean = word_out_ref[...] * inv_h
        if apply_elu:
            d_mean = jnp.where(d_mean > 0, d_mean, jnp.exp(d_mean) - 1.0)
            w_mean = jnp.where(w_mean > 0, w_mean, jnp.exp(w_mean) - 1.0)
        doc_out_ref[...] = d_mean
        word_out_ref[...] = w_mean


# --------------------------- host-side wrappers ---------------------------
def _stack_head_params(head_params, o_pad):
    """Stack per-head params; bf16 matmul operands; pad fc output to o_pad."""
    bf16 = jnp.bfloat16
    a_dsrc = jnp.stack([p["a1_src"][:, 0] for p in head_params]).astype(bf16)   # (H,F)
    a_wsrc = jnp.stack([p["a2_src"][:, 0] for p in head_params]).astype(bf16)   # (H,F)
    a_ddst = jnp.concatenate([p["a2_dst"] for p in head_params], 1).astype(bf16)  # (F,H)
    a_wdst = jnp.concatenate([p["a1_dst"] for p in head_params], 1).astype(bf16)  # (F,H)
    b1 = jnp.concatenate([p["b1"] for p in head_params], 1).astype(jnp.float32)  # (1,H)
    b2 = jnp.concatenate([p["b2"] for p in head_params], 1).astype(jnp.float32)  # (1,H)
    o = head_params[0]["fc_w"].shape[1]
    fcw = jnp.stack([jnp.pad(p["fc_w"], ((0, 0), (0, o_pad - o)))
                     for p in head_params]).astype(bf16)                        # (H,F,Opad)
    fcb = jnp.stack([jnp.pad(p["fc_b"], ((0, 0), (0, o_pad - o)),
                             constant_values=_NEG_INF)
                     for p in head_params]).astype(jnp.float32)                 # (H,1,Opad)
    return a_dsrc, a_wsrc, a_ddst, a_wdst, b1, b2, fcw, fcb


def _vmem_limit_bytes(nd, nw, f, o_pad, h):
    """Rough VMEM budget from actual shapes, with headroom."""
    f32, bf16 = 4, 2
    node = (nd + nw) * f * bf16                     # bf16 node features (resident)
    edge = 4 * nd * nw * f32                        # e1t/e2t + softmax temporaries
    agg = (nd + nw) * f * f32                       # h_doc / h_word
    outs = 2 * (nd + nw) * o_pad * f32              # resident outputs + head values
    params = 2 * h * (f * o_pad * bf16 + o_pad * f32) + 4 * h * f * bf16 + 4 * h * f32
    scratch = 2 * h * (nd + nw) * f32
    total = node + edge + agg + outs + params + scratch
    # 3x headroom for double-buffering / compiler temporaries.
    # TODO(synk): cap at ~56 MiB when targeting v7x's 64 MiB physical VMEM.
    return int(min(max(3 * total, 32 * 1024 * 1024), 100 * 1024 * 1024))


def multihead_gat_layer(doc_h, word_h, head_params, *, fuse_elu=False):
    """Fused multi-head GAT layer (merge='mean'), one pallas_call per layer."""
    H = len(head_params)
    Nd, F = doc_h.shape
    Nw = word_h.shape[0]
    O = head_params[0]["fc_w"].shape[1]
    O_pad = _round_up(O, 128)          # lane-dense outputs

    a_dsrc, a_wsrc, a_ddst, a_wdst, b1, b2, fcw, fcb = _stack_head_params(
        head_params, O_pad)
    d_bf = doc_h.astype(jnp.bfloat16)
    w_bf = word_h.astype(jnp.bfloat16)

    kernel = functools.partial(multihead_gat_kernel,
                               num_heads=H, apply_elu=fuse_elu)

    grid_spec = pltpu.PrefetchScalarGridSpec(
        num_scalar_prefetch=0,
        grid=(H,),
        in_specs=[
            # node features: constant block index -> DMA'd once, reused per head
            pl.BlockSpec((Nd, F), lambda h: (0, 0)),
            pl.BlockSpec((Nw, F), lambda h: (0, 0)),
            # stacked attention projections (used only at head 0)
            pl.BlockSpec((H, F), lambda h: (0, 0)),
            pl.BlockSpec((H, F), lambda h: (0, 0)),
            pl.BlockSpec((F, H), lambda h: (0, 0)),
            pl.BlockSpec((F, H), lambda h: (0, 0)),
            pl.BlockSpec((1, H), lambda h: (0, 0)),
            pl.BlockSpec((1, H), lambda h: (0, 0)),
            # per-head fc parameters
            pl.BlockSpec((1, F, O_pad), lambda h: (h, 0, 0)),
            pl.BlockSpec((1, 1, O_pad), lambda h: (h, 0, 0)),
        ],
        out_specs=[
            # outputs resident across the head axis (mean accumulators)
            pl.BlockSpec((Nd, O_pad), lambda h: (0, 0)),
            pl.BlockSpec((Nw, O_pad), lambda h: (0, 0)),
        ],
        scratch_shapes=[
            pltpu.VMEM((H, Nd), jnp.float32),    # a1_src . D   (rows)
            pltpu.VMEM((H, Nw), jnp.float32),    # a2_src . W   (rows)
            pltpu.VMEM((Nd, H), jnp.float32),    # a2_dst . D + b2 (cols)
            pltpu.VMEM((Nw, H), jnp.float32),    # a1_dst . W + b1 (cols)
        ],
    )

    doc_out, word_out = pl.pallas_call(
        kernel,
        out_shape=(jax.ShapeDtypeStruct((Nd, O_pad), jnp.float32),
                   jax.ShapeDtypeStruct((Nw, O_pad), jnp.float32)),
        grid_spec=grid_spec,
        compiler_params=pltpu.CompilerParams(
            dimension_semantics=("arbitrary",),          # head axis is a reduction
            vmem_limit_bytes=_vmem_limit_bytes(Nd, Nw, F, O_pad, H),
        ),
    )(d_bf, w_bf, a_dsrc, a_wsrc, a_ddst, a_wdst, b1, b2, fcw, fcb)

    return doc_out[:, :O], word_out[:, :O]


def gat_forward(doc_h, word_h, layer1_params, layer2_params):
    # inter-layer elu is fused into the layer-1 kernel epilogue
    doc_h, word_h = multihead_gat_layer(doc_h, word_h, layer1_params,
                                        fuse_elu=True)
    return multihead_gat_layer(doc_h, word_h, layer2_params, fuse_elu=False)


# ---------------- parameter construction (deterministic) ----------------
def init_head_params(key, in_dim, out_dim):
    ks = jax.random.split(key, 6)

    def u(k, shape, fan_in):
        bound = 1.0 / jnp.sqrt(fan_in)
        return jax.random.uniform(k, shape, jnp.float32, -bound, bound)

    # attn_fc_d2w / attn_fc_w2d : Linear(2*in_dim, 1) -> split weight halves
    a1 = u(ks[0], (2 * in_dim, 1), 2 * in_dim)
    a2 = u(ks[1], (2 * in_dim, 1), 2 * in_dim)
    return {
        "a1_src": a1[:in_dim], "a1_dst": a1[in_dim:],
        "b1": u(ks[2], (1, 1), 2 * in_dim),
        "a2_src": a2[:in_dim], "a2_dst": a2[in_dim:],
        "b2": u(ks[3], (1, 1), 2 * in_dim),
        # fc : Linear(in_dim, out_dim); stored already transposed (in, out)
        "fc_w": u(ks[4], (in_dim, out_dim), in_dim),
        "fc_b": u(ks[5], (1, out_dim), in_dim),
    }


# ---------------- plain-JAX reference (for correctness check) ----------------
def gat_layer_ref(D, W, p):
    sd = D @ p["a1_src"]
    sw = W @ p["a1_dst"]
    e1 = _leaky_relu(sd + sw.T + p["b1"][0, 0])
    h_word = _softmax(e1, axis=0).T @ D
    sw2 = W @ p["a2_src"]
    sd2 = D @ p["a2_dst"]
    e2 = _leaky_relu(sw2 + sd2.T + p["b2"][0, 0])
    h_doc = _softmax(e2, axis=0).T @ W
    f = lambda h: _softmax(h @ p["fc_w"] + p["fc_b"], axis=1)
    return f(h_doc), f(h_word)


def gat_forward_ref(D, W, l1, l2):
    d = jnp.mean(jnp.stack([gat_layer_ref(D, W, p)[0] for p in l1], 1), 1)
    w = jnp.mean(jnp.stack([gat_layer_ref(D, W, p)[1] for p in l1], 1), 1)
    d, w = jax.nn.elu(d), jax.nn.elu(w)
    d2 = jnp.mean(jnp.stack([gat_layer_ref(d, w, p)[0] for p in l2], 1), 1)
    w2 = jnp.mean(jnp.stack([gat_layer_ref(d, w, p)[1] for p in l2], 1), 1)
    return d2, w2


if __name__ == "__main__":
    # small, forward-consistent shapes
    Nd, Nw = 8, 16          # number of doc / word nodes
    in_dim, hidden_dim, out_dim, num_heads = 32, 32, 16, 2

    key = jax.random.PRNGKey(0)
    k_doc, k_word, k_p = jax.random.split(key, 3)
    doc_hidden = jax.random.normal(k_doc, (Nd, in_dim), jnp.float32)
    word_hidden = jax.random.normal(k_word, (Nw, in_dim), jnp.float32)

    pkeys = jax.random.split(k_p, num_heads + 1)
    layer1_params = [init_head_params(pkeys[i], in_dim, hidden_dim)
                     for i in range(num_heads)]
    layer2_params = [init_head_params(pkeys[num_heads], hidden_dim, out_dim)]

    run = jax.jit(functools.partial(gat_forward,
                                    layer1_params=layer1_params,
                                    layer2_params=layer2_params))
    doc_out, word_out = run(doc_hidden, word_hidden)
    jax.block_until_ready((doc_out, word_out))

    # verify against plain-JAX f32 reference (kernel uses bf16 MXU operands and
    # an approx reciprocal in the fc softmax, hence the loosened tolerance)
    doc_ref, word_ref = gat_forward_ref(doc_hidden, word_hidden,
                                        layer1_params, layer2_params)
    assert doc_out.shape == (Nd, out_dim) and word_out.shape == (Nw, out_dim)
    assert jnp.allclose(doc_out, doc_ref, atol=2e-2, rtol=2e-2)
    assert jnp.allclose(word_out, word_ref, atol=2e-2, rtol=2e-2)

    print("KERNEL_OK")
</pallas_src>

<mosaic_0001>
module attributes {stable_mosaic.version = 11 : i64} {
  func.func @multihead_gat_kernel(%arg0: i32, %arg1: memref<8x32xbf16, #tpu.memory_space<vmem>>, %arg2: memref<16x32xbf16, #tpu.memory_space<vmem>>, %arg3: memref<2x32xbf16, #tpu.memory_space<vmem>>, %arg4: memref<2x32xbf16, #tpu.memory_space<vmem>>, %arg5: memref<32x2xbf16, #tpu.memory_space<vmem>>, %arg6: memref<32x2xbf16, #tpu.memory_space<vmem>>, %arg7: memref<1x2xf32, #tpu.memory_space<vmem>>, %arg8: memref<1x2xf32, #tpu.memory_space<vmem>>, %arg9: memref<1x32x128xbf16, #tpu.memory_space<vmem>>, %arg10: memref<1x1x128xf32, #tpu.memory_space<vmem>>, %arg11: memref<8x128xf32, #tpu.memory_space<vmem>>, %arg12: memref<16x128xf32, #tpu.memory_space<vmem>>, %arg13: memref<2x8xf32, #tpu.memory_space<vmem>>, %arg14: memref<2x16xf32, #tpu.memory_space<vmem>>, %arg15: memref<8x2xf32, #tpu.memory_space<vmem>>, %arg16: memref<16x2xf32, #tpu.memory_space<vmem>>) attributes {dimension_semantics = [#tpu.dimension_semantics<arbitrary>], iteration_bounds = array<i64: 2>, scalar_prefetch = 0 : i64, scratch_operands = 4 : i64, tpu.core_type = #tpu.core_type<tc>, window_params = [{pipeline_mode = #tpu.pipeline_mode<synchronous>, transform_indices = @transform_0, window_bounds = array<i64: 8, 32>}, {pipeline_mode = #tpu.pipeline_mode<synchronous>, transform_indices = @transform_1, window_bounds = array<i64: 16, 32>}, {pipeline_mode = #tpu.pipeline_mode<synchronous>, transform_indices = @transform_2, window_bounds = array<i64: 2, 32>}, {pipeline_mode = #tpu.pipeline_mode<synchronous>, transform_indices = @transform_3, window_bounds = array<i64: 2, 32>}, {pipeline_mode = #tpu.pipeline_mode<synchronous>, transform_indices = @transform_4, window_bounds = array<i64: 32, 2>}, {pipeline_mode = #tpu.pipeline_mode<synchronous>, transform_indices = @transform_5, window_bounds = array<i64: 32, 2>}, {pipeline_mode = #tpu.pipeline_mode<synchronous>, transform_indices = @transform_6, window_bounds = array<i64: 1, 2>}, {pipeline_mode = #tpu.pipeline_mode<synchronous>, transform_indices = @transform_7, window_bounds = array<i64: 1, 2>}, {transform_indices = @transform_8, window_bounds = array<i64: 1, 32, 128>}, {transform_indices = @transform_9, window_bounds = array<i64: 1, 1, 128>}, {pipeline_mode = #tpu.pipeline_mode<synchronous>, transform_indices = @transform_10, window_bounds = array<i64: 8, 128>}, {pipeline_mode = #tpu.pipeline_mode<synchronous>, transform_indices = @transform_11, window_bounds = array<i64: 16, 128>}]} {
    %c0 = arith.constant 0 : index
    %c0_0 = arith.constant 0 : index
    %0 = vector.load %arg1[%c0, %c0_0] : memref<8x32xbf16, #tpu.memory_space<vmem>>, vector<8x32xbf16>
    %c0_1 = arith.constant 0 : index
    %c0_2 = arith.constant 0 : index
    %1 = vector.load %arg2[%c0_1, %c0_2] : memref<16x32xbf16, #tpu.memory_space<vmem>>, vector<16x32xbf16>
    %c0_i32 = arith.constant 0 : i32
    %2 = arith.cmpi eq, %arg0, %c0_i32 : i32
    %3 = arith.extui %2 : i1 to i32
    %c0_i32_3 = arith.constant 0 : i32
    %4 = arith.cmpi ne, %3, %c0_i32_3 : i32
    scf.if %4 {
      %c0_40 = arith.constant 0 : index
      %c0_41 = arith.constant 0 : index
      %105 = vector.load %arg3[%c0_40, %c0_41] : memref<2x32xbf16, #tpu.memory_space<vmem>>, vector<2x32xbf16>
      %cst_42 = arith.constant dense<0.000000e+00> : vector<2x8xf32>
      %106 = tpu.matmul %105, %0, %cst_42 {dimension_numbers = #tpu.dot_dimension_numbers<[1], [1], [0], [0], [0, 0, 1, 0], [], []>} : vector<2x32xbf16>, vector<8x32xbf16>, vector<2x8xf32> -> vector<2x8xf32>
      %c0_43 = arith.constant 0 : index
      %c0_44 = arith.constant 0 : index
      %107 = vector.load %arg13[%c0_43, %c0_44] : memref<2x8xf32, #tpu.memory_space<vmem>>, vector<2x8xf32>
      tpu.vector_store %arg13[%c0_43, %c0_44], %106 {strides = array<i32>} : memref<2x8xf32, #tpu.memory_space<vmem>>, vector<2x8xf32>,
      %c0_45 = arith.constant 0 : index
      %c0_46 = arith.constant 0 : index
      %108 = vector.load %arg4[%c0_45, %c0_46] : memref<2x32xbf16, #tpu.memory_space<vmem>>, vector<2x32xbf16>
      %cst_47 = arith.constant dense<0.000000e+00> : vector<2x16xf32>
      %109 = tpu.matmul %108, %1, %cst_47 {dimension_numbers = #tpu.dot_dimension_numbers<[1], [1], [0], [0], [0, 0, 1, 0], [], []>} : vector<2x32xbf16>, vector<16x32xbf16>, vector<2x16xf32> -> vector<2x16xf32>
      %c0_48 = arith.constant 0 : index
      %c0_49 = arith.constant 0 : index
      %110 = vector.load %arg14[%c0_48, %c0_49] : memref<2x16xf32, #tpu.memory_space<vmem>>, vector<2x16xf32>
      tpu.vector_store %arg14[%c0_48, %c0_49], %109 {strides = array<i32>} : memref<2x16xf32, #tpu.memory_space<vmem>>, vector<2x16xf32>,
      %c0_50 = arith.constant 0 : index
      %c0_51 = arith.constant 0 : index
      %111 = vector.load %arg5[%c0_50, %c0_51] : memref<32x2xbf16, #tpu.memory_space<vmem>>, vector<32x2xbf16>
      %cst_52 = arith.constant dense<0.000000e+00> : vector<8x2xf32>
      %112 = tpu.matmul %0, %111, %cst_52 {dimension_numbers = #tpu.dot_dimension_numbers<[1], [0], [0], [1], [0, 0, 1, 1], [], []>} : vector<8x32xbf16>, vector<32x2xbf16>, vector<8x2xf32> -> vector<8x2xf32>
      %c0_53 = arith.constant 0 : index
      %c0_54 = arith.constant 0 : index
      %113 = vector.load %arg8[%c0_53, %c0_54] : memref<1x2xf32, #tpu.memory_space<vmem>>, vector<1x2xf32>
      %114 = vector.broadcast %113 : vector<1x2xf32> to vector<8x2xf32>
      %115 = arith.addf %112, %114 : vector<8x2xf32>
      %c0_55 = arith.constant 0 : index
      %c0_56 = arith.constant 0 : index
      %116 = vector.load %arg15[%c0_55, %c0_56] : memref<8x2xf32, #tpu.memory_space<vmem>>, vector<8x2xf32>
      tpu.vector_store %arg15[%c0_55, %c0_56], %115 {strides = array<i32>} : memref<8x2xf32, #tpu.memory_space<vmem>>, vector<8x2xf32>,
      %c0_57 = arith.constant 0 : index
      %c0_58 = arith.constant 0 : index
      %117 = vector.load %arg6[%c0_57, %c0_58] : memref<32x2xbf16, #tpu.memory_space<vmem>>, vector<32x2xbf16>
      %cst_59 = arith.constant dense<0.000000e+00> : vector<16x2xf32>
      %118 = tpu.matmul %1, %117, %cst_59 {dimension_numbers = #tpu.dot_dimension_numbers<[1], [0], [0], [1], [0, 0, 1, 1], [], []>} : vector<16x32xbf16>, vector<32x2xbf16>, vector<16x2xf32> -> vector<16x2xf32>
      %c0_60 = arith.constant 0 : index
      %c0_61 = arith.constant 0 : index
      %119 = vector.load %arg7[%c0_60, %c0_61] : memref<1x2xf32, #tpu.memory_space<vmem>>, vector<1x2xf32>
      %120 = vector.broadcast %119 : vector<1x2xf32> to vector<16x2xf32>
      %121 = arith.addf %118, %120 : vector<16x2xf32>
      %c0_62 = arith.constant 0 : index
      %c0_63 = arith.constant 0 : index
      %122 = vector.load %arg16[%c0_62, %c0_63] : memref<16x2xf32, #tpu.memory_space<vmem>>, vector<16x2xf32>
      tpu.vector_store %arg16[%c0_62, %c0_63], %121 {strides = array<i32>} : memref<16x2xf32, #tpu.memory_space<vmem>>, vector<16x2xf32>,
    } else {
    }
    %5 = arith.index_cast %arg0 : i32 to index
    %c0_4 = arith.constant 0 : index
    %6 = vector.load %arg13[%5, %c0_4] : memref<2x8xf32, #tpu.memory_space<vmem>>, vector<1x8xf32>
    %7 = arith.index_cast %arg0 : i32 to index
    %c0_5 = arith.constant 0 : index
    %8 = vector.load %arg14[%7, %c0_5] : memref<2x16xf32, #tpu.memory_space<vmem>>, vector<1x16xf32>
    %9 = tpu.iota {dimensions = array<i32: 1>} : vector<1x2xi32>
    %10 = vector.broadcast %arg0 : i32 to vector<1x2xi32>
    %11 = arith.cmpi eq, %9, %10 : vector<1x2xi32>
    %c0_6 = arith.constant 0 : index
    %c0_7 = arith.constant 0 : index
    %12 = vector.load %arg15[%c0_6, %c0_7] : memref<8x2xf32, #tpu.memory_space<vmem>>, vector<8x2xf32>
    %cst = arith.constant 0.000000e+00 : f32
    %13 = vector.shape_cast %11 : vector<1x2xi1> to vector<1x2xi1>
    %14 = vector.broadcast %13 : vector<1x2xi1> to vector<8x2xi1>
    %15 = vector.broadcast %cst : f32 to vector<8x2xf32>
    %16 = arith.select %14, %12, %15 : vector<8x2xi1>, vector<8x2xf32>
    %cst_8 = arith.constant dense<0.000000e+00> : vector<8xf32>
    %17 = vector.multi_reduction <add>, %16, %cst_8 [1] : vector<8x2xf32> to vector<8xf32>
    %18 = vector.shape_cast %17 : vector<8xf32> to vector<8x1xf32>
    %c0_9 = arith.constant 0 : index
    %c0_10 = arith.constant 0 : index
    %19 = vector.load %arg16[%c0_9, %c0_10] : memref<16x2xf32, #tpu.memory_space<vmem>>, vector<16x2xf32>
    %cst_11 = arith.constant 0.000000e+00 : f32
    %20 = vector.shape_cast %11 : vector<1x2xi1> to vector<1x2xi1>
    %21 = vector.broadcast %20 : vector<1x2xi1> to vector<16x2xi1>
    %22 = vector.broadcast %cst_11 : f32 to vector<16x2xf32>
    %23 = arith.select %21, %19, %22 : vector<16x2xi1>, vector<16x2xf32>
    %cst_12 = arith.constant dense<0.000000e+00> : vector<16xf32>
    %24 = vector.multi_reduction <add>, %23, %cst_12 [1] : vector<16x2xf32> to vector<16xf32>
    %25 = vector.shape_cast %24 : vector<16xf32> to vector<16x1xf32>
    %26 = vector.broadcast %25 : vector<16x1xf32> to vector<16x8xf32>
    %27 = vector.broadcast %6 : vector<1x8xf32> to vector<16x8xf32>
    %28 = arith.addf %26, %27 : vector<16x8xf32>
    %cst_13 = arith.constant 0.000000e+00 : f32
    %29 = vector.broadcast %cst_13 : f32 to vector<16x8xf32>
    %30 = arith.cmpf ogt, %28, %29 : vector<16x8xf32>
    %cst_14 = arith.constant 0.00999999977 : f32
    %31 = vector.broadcast %cst_14 : f32 to vector<16x8xf32>
    %32 = arith.mulf %31, %28 : vector<16x8xf32>
    %33 = arith.select %30, %28, %32 : vector<16x8xi1>, vector<16x8xf32>
    %cst_15 = arith.constant dense<0xFF800000> : vector<16xf32>
    %34 = vector.multi_reduction <maximumf>, %33, %cst_15 [1] : vector<16x8xf32> to vector<16xf32>
    %35 = vector.shape_cast %34 : vector<16xf32> to vector<16x1xf32>
    %36 = vector.broadcast %35 : vector<16x1xf32> to vector<16x8xf32>
    %37 = arith.subf %33, %36 : vector<16x8xf32>
    %38 = math.exp %37 : vector<16x8xf32>
    %cst_16 = arith.constant dense<0.000000e+00> : vector<16xf32>
    %39 = vector.multi_reduction <add>, %38, %cst_16 [1] : vector<16x8xf32> to vector<16xf32>
    %40 = vector.shape_cast %39 : vector<16xf32> to vector<16x1xf32>
    %41 = vector.broadcast %40 : vector<16x1xf32> to vector<16x8xf32>
    %42 = arith.divf %38, %41 : vector<16x8xf32>
    %43 = arith.truncf %42 : vector<16x8xf32> to vector<16x8xbf16>
    %cst_17 = arith.constant dense<0.000000e+00> : vector<16x32xf32>
    %44 = tpu.matmul %43, %0, %cst_17 {dimension_numbers = #tpu.dot_dimension_numbers<[1], [0], [0], [1], [0, 0, 1, 1], [], []>} : vector<16x8xbf16>, vector<8x32xbf16>, vector<16x32xf32> -> vector<16x32xf32>
    %45 = vector.broadcast %18 : vector<8x1xf32> to vector<8x16xf32>
    %46 = vector.broadcast %8 : vector<1x16xf32> to vector<8x16xf32>
    %47 = arith.addf %45, %46 : vector<8x16xf32>
    %cst_18 = arith.constant 0.000000e+00 : f32
    %48 = vector.broadcast %cst_18 : f32 to vector<8x16xf32>
    %49 = arith.cmpf ogt, %47, %48 : vector<8x16xf32>
    %cst_19 = arith.constant 0.00999999977 : f32
    %50 = vector.broadcast %cst_19 : f32 to vector<8x16xf32>
    %51 = arith.mulf %50, %47 : vector<8x16xf32>
    %52 = arith.select %49, %47, %51 : vector<8x16xi1>, vector<8x16xf32>
    %cst_20 = arith.constant dense<0xFF800000> : vector<8xf32>
    %53 = vector.multi_reduction <maximumf>, %52, %cst_20 [1] : vector<8x16xf32> to vector<8xf32>
    %54 = vector.shape_cast %53 : vector<8xf32> to vector<8x1xf32>
    %55 = vector.broadcast %54 : vector<8x1xf32> to vector<8x16xf32>
    %56 = arith.subf %52, %55 : vector<8x16xf32>
    %57 = math.exp %56 : vector<8x16xf32>
    %cst_21 = arith.constant dense<0.000000e+00> : vector<8xf32>
    %58 = vector.multi_reduction <add>, %57, %cst_21 [1] : vector<8x16xf32> to vector<8xf32>
    %59 = vector.shape_cast %58 : vector<8xf32> to vector<8x1xf32>
    %60 = vector.broadcast %59 : vector<8x1xf32> to vector<8x16xf32>
    %61 = arith.divf %57, %60 : vector<8x16xf32>
    %62 = arith.truncf %61 : vector<8x16xf32> to vector<8x16xbf16>
    %cst_22 = arith.constant dense<0.000000e+00> : vector<8x32xf32>
    %63 = tpu.matmul %62, %1, %cst_22 {dimension_numbers = #tpu.dot_dimension_numbers<[1], [0], [0], [1], [0, 0, 1, 1], [], []>} : vector<8x16xbf16>, vector<16x32xbf16>, vector<8x32xf32> -> vector<8x32xf32>
    %c0_23 = arith.constant 0 : index
    %c0_24 = arith.constant 0 : index
    %c0_25 = arith.constant 0 : index
    %64 = vector.load %arg9[%c0_23, %c0_24, %c0_25] : memref<1x32x128xbf16, #tpu.memory_space<vmem>>, vector<1x32x128xbf16>
    %65 = vector.shape_cast %64 : vector<1x32x128xbf16> to vector<32x128xbf16>
    %c0_26 = arith.constant 0 : index
    %c0_27 = arith.constant 0 : index
    %c0_28 = arith.constant 0 : index
    %66 = vector.load %arg10[%c0_26, %c0_27, %c0_28] : memref<1x1x128xf32, #tpu.memory_space<vmem>>, vector<1x1x128xf32>
    %67 = vector.shape_cast %66 : vector<1x1x128xf32> to vector<1x128xf32>
    %68 = arith.truncf %63 : vector<8x32xf32> to vector<8x32xbf16>
    %cst_29 = arith.constant dense<0.000000e+00> : vector<8x128xf32>
    %69 = tpu.matmul %68, %65, %cst_29 {dimension_numbers = #tpu.dot_dimension_numbers<[1], [0], [0], [1], [0, 0, 1, 1], [], []>} : vector<8x32xbf16>, vector<32x128xbf16>, vector<8x128xf32> -> vector<8x128xf32>
    %70 = vector.broadcast %67 : vector<1x128xf32> to vector<8x128xf32>
    %71 = arith.addf %69, %70 : vector<8x128xf32>
    %cst_30 = arith.constant dense<0xFF800000> : vector<8xf32>
    %72 = vector.multi_reduction <maximumf>, %71, %cst_30 [1] : vector<8x128xf32> to vector<8xf32>
    %73 = vector.shape_cast %72 : vector<8xf32> to vector<8x1xf32>
    %74 = vector.broadcast %73 : vector<8x1xf32> to vector<8x128xf32>
    %75 = arith.subf %71, %74 : vector<8x128xf32>
    %76 = math.exp %75 : vector<8x128xf32>
    %cst_31 = arith.constant dense<0.000000e+00> : vector<8xf32>
    %77 = vector.multi_reduction <add>, %76, %cst_31 [1] : vector<8x128xf32> to vector<8xf32>
    %78 = vector.shape_cast %77 : vector<8xf32> to vector<8x1xf32>
    %79 = tpu.reciprocal %78 {approx = true} : vector<8x1xf32> -> vector<8x1xf32>
    %80 = vector.broadcast %79 : vector<8x1xf32> to vector<8x128xf32>
    %81 = arith.mulf %76, %80 : vector<8x128xf32>
    %82 = arith.truncf %44 : vector<16x32xf32> to vector<16x32xbf16>
    %cst_32 = arith.constant dense<0.000000e+00> : vector<16x128xf32>
    %83 = tpu.matmul %82, %65, %cst_32 {dimension_numbers = #tpu.dot_dimension_numbers<[1], [0], [0], [1], [0, 0, 1, 1], [], []>} : vector<16x32xbf16>, vector<32x128xbf16>, vector<16x128xf32> -> vector<16x128xf32>
    %84 = vector.broadcast %67 : vector<1x128xf32> to vector<16x128xf32>
    %85 = arith.addf %83, %84 : vector<16x128xf32>
    %cst_33 = arith.constant dense<0xFF800000> : vector<16xf32>
    %86 = vector.multi_reduction <maximumf>, %85, %cst_33 [1] : vector<16x128xf32> to vector<16xf32>
    %87 = vector.shape_cast %86 : vector<16xf32> to vector<16x1xf32>
    %88 = vector.broadcast %87 : vector<16x1xf32> to vector<16x128xf32>
    %89 = arith.subf %85, %88 : vector<16x128xf32>
    %90 = math.exp %89 : vector<16x128xf32>
    %cst_34 = arith.constant dense<0.000000e+00> : vector<16xf32>
    %91 = vector.multi_reduction <add>, %90, %cst_34 [1] : vector<16x128xf32> to vector<16xf32>
    %92 = vector.shape_cast %91 : vector<16xf32> to vector<16x1xf32>
    %93 = tpu.reciprocal %92 {approx = true} : vector<16x1xf32> -> vector<16x1xf32>
    %94 = vector.broadcast %93 : vector<16x1xf32> to vector<16x128xf32>
    %95 = arith.mulf %90, %94 : vector<16x128xf32>
    %c0_i32_35 = arith.constant 0 : i32
    %96 = arith.cmpi eq, %arg0, %c0_i32_35 : i32
    %97 = arith.extui %96 : i1 to i32
    %c0_i32_36 = arith.constant 0 : i32
    %98 = arith.cmpi ne, %97, %c0_i32_36 : i32
    scf.if %98 {
      %c0_40 = arith.constant 0 : index
      %c0_41 = arith.constant 0 : index
      %105 = vector.load %arg11[%c0_40, %c0_41] : memref<8x128xf32, #tpu.memory_space<vmem>>, vector<8x128xf32>
      tpu.vector_store %arg11[%c0_40, %c0_41], %81 {strides = array<i32>} : memref<8x128xf32, #tpu.memory_space<vmem>>, vector<8x128xf32>,
      %c0_42 = arith.constant 0 : index
      %c0_43 = arith.constant 0 : index
      %106 = vector.load %arg12[%c0_42, %c0_43] : memref<16x128xf32, #tpu.memory_space<vmem>>, vector<16x128xf32>
      tpu.vector_store %arg12[%c0_42, %c0_43], %95 {strides = array<i32>} : memref<16x128xf32, #tpu.memory_space<vmem>>, vector<16x128xf32>,
    } else {
    }
    %c0_i32_37 = arith.constant 0 : i32
    %99 = arith.cmpi sgt, %arg0, %c0_i32_37 : i32
    %100 = arith.extui %99 : i1 to i32
    %c0_i32_38 = arith.constant 0 : i32
    %101 = arith.cmpi ne, %100, %c0_i32_38 : i32
    scf.if %101 {
      %c0_40 = arith.constant 0 : index
      %c0_41 = arith.constant 0 : index
      %105 = vector.load %arg11[%c0_40, %c0_41] : memref<8x128xf32, #tpu.memory_space<vmem>>, vector<8x128xf32>
      %106 = arith.addf %105, %81 : vector<8x128xf32>
      %c0_42 = arith.constant 0 : index
      %c0_43 = arith.constant 0 : index
      %107 = vector.load %arg11[%c0_42, %c0_43] : memref<8x128xf32, #tpu.memory_space<vmem>>, vector<8x128xf32>
      tpu.vector_store %arg11[%c0_42, %c0_43], %106 {strides = array<i32>} : memref<8x128xf32, #tpu.memory_space<vmem>>, vector<8x128xf32>,
      %c0_44 = arith.constant 0 : index
      %c0_45 = arith.constant 0 : index
      %108 = vector.load %arg12[%c0_44, %c0_45] : memref<16x128xf32, #tpu.memory_space<vmem>>, vector<16x128xf32>
      %109 = arith.addf %108, %95 : vector<16x128xf32>
      %c0_46 = arith.constant 0 : index
      %c0_47 = arith.constant 0 : index
      %110 = vector.load %arg12[%c0_46, %c0_47] : memref<16x128xf32, #tpu.memory_space<vmem>>, vector<16x128xf32>
      tpu.vector_store %arg12[%c0_46, %c0_47], %109 {strides = array<i32>} : memref<16x128xf32, #tpu.memory_space<vmem>>, vector<16x128xf32>,
    } else {
    }
    %c1_i32 = arith.constant 1 : i32
    %102 = arith.cmpi eq, %arg0, %c1_i32 : i32
    %103 = arith.extui %102 : i1 to i32
    %c0_i32_39 = arith.constant 0 : i32
    %104 = arith.cmpi ne, %103, %c0_i32_39 : i32
    scf.if %104 {
      %c0_40 = arith.constant 0 : index
      %c0_41 = arith.constant 0 : index
      %105 = vector.load %arg11[%c0_40, %c0_41] : memref<8x128xf32, #tpu.memory_space<vmem>>, vector<8x128xf32>
      %cst_42 = arith.constant 5.000000e-01 : f32
      %106 = vector.broadcast %cst_42 : f32 to vector<8x128xf32>
      %107 = arith.mulf %105, %106 : vector<8x128xf32>
      %c0_43 = arith.constant 0 : index
      %c0_44 = arith.constant 0 : index
      %108 = vector.load %arg12[%c0_43, %c0_44] : memref<16x128xf32, #tpu.memory_space<vmem>>, vector<16x128xf32>
      %cst_45 = arith.constant 5.000000e-01 : f32
      %109 = vector.broadcast %cst_45 : f32 to vector<16x128xf32>
      %110 = arith.mulf %108, %109 : vector<16x128xf32>
      %cst_46 = arith.constant 0.000000e+00 : f32
      %111 = vector.broadcast %cst_46 : f32 to vector<8x128xf32>
      %112 = arith.cmpf ogt, %107, %111 : vector<8x128xf32>
      %113 = math.exp %107 : vector<8x128xf32>
      %cst_47 = arith.constant 1.000000e+00 : f32
      %114 = vector.broadcast %cst_47 : f32 to vector<8x128xf32>
      %115 = arith.subf %113, %114 : vector<8x128xf32>
      %116 = arith.select %112, %107, %115 : vector<8x128xi1>, vector<8x128xf32>
      %cst_48 = arith.constant 0.000000e+00 : f32
      %117 = vector.broadcast %cst_48 : f32 to vector<16x128xf32>
      %118 = arith.cmpf ogt, %110, %117 : vector<16x128xf32>
      %119 = math.exp %110 : vector<16x128xf32>
      %cst_49 = arith.constant 1.000000e+00 : f32
      %120 = vector.broadcast %cst_49 : f32 to vector<16x128xf32>
      %121 = arith.subf %119, %120 : vector<16x128xf32>
      %122 = arith.select %118, %110, %121 : vector<16x128xi1>, vector<16x128xf32>
      %c0_50 = arith.constant 0 : index
      %c0_51 = arith.constant 0 : index
      %123 = vector.load %arg11[%c0_50, %c0_51] : memref<8x128xf32, #tpu.memory_space<vmem>>, vector<8x128xf32>
      tpu.vector_store %arg11[%c0_50, %c0_51], %116 {strides = array<i32>} : memref<8x128xf32, #tpu.memory_space<vmem>>, vector<8x128xf32>,
      %c0_52 = arith.constant 0 : index
      %c0_53 = arith.constant 0 : index
      %124 = vector.load %arg12[%c0_52, %c0_53] : memref<16x128xf32, #tpu.memory_space<vmem>>, vector<16x128xf32>
      tpu.vector_store %arg12[%c0_52, %c0_53], %122 {strides = array<i32>} : memref<16x128xf32, #tpu.memory_space<vmem>>, vector<16x128xf32>,
    } else {
    }
    return
  }
  func.func @transform_0(%arg0: i32) -> (i32, i32) {
    %c0_i32 = arith.constant 0 : i32
    %c0_i32_0 = arith.constant 0 : i32
    %c0_i32_1 = arith.constant 0 : i32
    return %c0_i32, %c0_i32_0 : i32, i32
  }
  func.func @transform_1(%arg0: i32) -> (i32, i32) {
    %c0_i32 = arith.constant 0 : i32
    %c0_i32_0 = arith.constant 0 : i32
    %c0_i32_1 = arith.constant 0 : i32
    return %c0_i32, %c0_i32_0 : i32, i32
  }
  func.func @transform_2(%arg0: i32) -> (i32, i32) {
    %c0_i32 = arith.constant 0 : i32
    %c0_i32_0 = arith.constant 0 : i32
    %c0_i32_1 = arith.constant 0 : i32
    return %c0_i32, %c0_i32_0 : i32, i32
  }
  func.func @transform_3(%arg0: i32) -> (i32, i32) {
    %c0_i32 = arith.constant 0 : i32
    %c0_i32_0 = arith.constant 0 : i32
    %c0_i32_1 = arith.constant 0 : i32
    return %c0_i32, %c0_i32_0 : i32, i32
  }
  func.func @transform_4(%arg0: i32) -> (i32, i32) {
    %c0_i32 = arith.constant 0 : i32
    %c0_i32_0 = arith.constant 0 : i32
    %c0_i32_1 = arith.constant 0 : i32
    return %c0_i32, %c0_i32_0 : i32, i32
  }
  func.func @transform_5(%arg0: i32) -> (i32, i32) {
    %c0_i32 = arith.constant 0 : i32
    %c0_i32_0 = arith.constant 0 : i32
    %c0_i32_1 = arith.constant 0 : i32
    return %c0_i32, %c0_i32_0 : i32, i32
  }
  func.func @transform_6(%arg0: i32) -> (i32, i32) {
    %c0_i32 = arith.constant 0 : i32
    %c0_i32_0 = arith.constant 0 : i32
    %c0_i32_1 = arith.constant 0 : i32
    return %c0_i32, %c0_i32_0 : i32, i32
  }
  func.func @transform_7(%arg0: i32) -> (i32, i32) {
    %c0_i32 = arith.constant 0 : i32
    %c0_i32_0 = arith.constant 0 : i32
    %c0_i32_1 = arith.constant 0 : i32
    return %c0_i32, %c0_i32_0 : i32, i32
  }
  func.func @transform_8(%arg0: i32) -> (i32, i32, i32) {
    %c0_i32 = arith.constant 0 : i32
    %c0_i32_0 = arith.constant 0 : i32
    %c0_i32_1 = arith.constant 0 : i32
    return %arg0, %c0_i32, %c0_i32_0 : i32, i32, i32
  }
  func.func @transform_9(%arg0: i32) -> (i32, i32, i32) {
    %c0_i32 = arith.constant 0 : i32
    %c0_i32_0 = arith.constant 0 : i32
    %c0_i32_1 = arith.constant 0 : i32
    return %arg0, %c0_i32, %c0_i32_0 : i32, i32, i32
  }
  func.func @transform_10(%arg0: i32) -> (i32, i32) {
    %c0_i32 = arith.constant 0 : i32
    %c0_i32_0 = arith.constant 0 : i32
    %c0_i32_1 = arith.constant 0 : i32
    return %c0_i32, %c0_i32_0 : i32, i32
  }
  func.func @transform_11(%arg0: i32) -> (i32, i32) {
    %c0_i32 = arith.constant 0 : i32
    %c0_i32_0 = arith.constant 0 : i32
    %c0_i32_1 = arith.constant 0 : i32
    return %c0_i32, %c0_i32_0 : i32, i32
  }
}

module attributes {stable_mosaic.version = 11 : i64} {
  func.func @multihead_gat_kernel(%arg0: i32, %arg1: memref<8x32xbf16, #tpu.memory_space<vmem>>, %arg2: memref<16x32xbf16, #tpu.memory_space<vmem>>, %arg3: memref<1x32xbf16, #tpu.memory_space<vmem>>, %arg4: memref<1x32xbf16, #tpu.memory_space<vmem>>, %arg5: memref<32x1xbf16, #tpu.memory_space<vmem>>, %arg6: memref<32x1xbf16, #tpu.memory_space<vmem>>, %arg7: memref<1x1xf32, #tpu.memory_space<vmem>>, %arg8: memref<1x1xf32, #tpu.memory_space<vmem>>, %arg9: memref<1x32x128xbf16, #tpu.memory_space<vmem>>, %arg10: memref<1x1x128xf32, #tpu.memory_space<vmem>>, %arg11: memref<8x128xf32, #tpu.memory_space<vmem>>, %arg12: memref<16x128xf32, #tpu.memory_space<vmem>>, %arg13: memref<1x8xf32, #tpu.memory_space<vmem>>, %arg14: memref<1x16xf32, #tpu.memory_space<vmem>>, %arg15: memref<8x1xf32, #tpu.memory_space<vmem>>, %arg16: memref<16x1xf32, #tpu.memory_space<vmem>>) attributes {dimension_semantics = [#tpu.dimension_semantics<arbitrary>], iteration_bounds = array<i64: 1>, scalar_prefetch = 0 : i64, scratch_operands = 4 : i64, tpu.core_type = #tpu.core_type<tc>, window_params = [{pipeline_mode = #tpu.pipeline_mode<synchronous>, transform_indices = @transform_0, window_bounds = array<i64: 8, 32>}, {pipeline_mode = #tpu.pipeline_mode<synchronous>, transform_indices = @transform_1, window_bounds = array<i64: 16, 32>}, {pipeline_mode = #tpu.pipeline_mode<synchronous>, transform_indices = @transform_2, window_bounds = array<i64: 1, 32>}, {pipeline_mode = #tpu.pipeline_mode<synchronous>, transform_indices = @transform_3, window_bounds = array<i64: 1, 32>}, {pipeline_mode = #tpu.pipeline_mode<synchronous>, transform_indices = @transform_4, window_bounds = array<i64: 32, 1>}, {pipeline_mode = #tpu.pipeline_mode<synchronous>, transform_indices = @transform_5, window_bounds = array<i64: 32, 1>}, {pipeline_mode = #tpu.pipeline_mode<synchronous>, transform_indices = @transform_6, window_bounds = array<i64: 1, 1>}, {pipeline_mode = #tpu.pipeline_mode<synchronous>, transform_indices = @transform_7, window_bounds = array<i64: 1, 1>}, {transform_indices = @transform_8, window_bounds = array<i64: 1, 32, 128>}, {transform_indices = @transform_9, window_bounds = array<i64: 1, 1, 128>}, {pipeline_mode = #tpu.pipeline_mode<synchronous>, transform_indices = @transform_10, window_bounds = array<i64: 8, 128>}, {pipeline_mode = #tpu.pipeline_mode<synchronous>, transform_indices = @transform_11, window_bounds = array<i64: 16, 128>}]} {
    %c0 = arith.constant 0 : index
    %c0_0 = arith.constant 0 : index
    %0 = vector.load %arg1[%c0, %c0_0] : memref<8x32xbf16, #tpu.memory_space<vmem>>, vector<8x32xbf16>
    %c0_1 = arith.constant 0 : index
    %c0_2 = arith.constant 0 : index
    %1 = vector.load %arg2[%c0_1, %c0_2] : memref<16x32xbf16, #tpu.memory_space<vmem>>, vector<16x32xbf16>
    %c0_i32 = arith.constant 0 : i32
    %2 = arith.cmpi eq, %arg0, %c0_i32 : i32
    %3 = arith.extui %2 : i1 to i32
    %c0_i32_3 = arith.constant 0 : i32
    %4 = arith.cmpi ne, %3, %c0_i32_3 : i32
    scf.if %4 {
      %c0_41 = arith.constant 0 : index
      %c0_42 = arith.constant 0 : index
      %105 = vector.load %arg3[%c0_41, %c0_42] : memref<1x32xbf16, #tpu.memory_space<vmem>>, vector<1x32xbf16>
      %cst_43 = arith.constant dense<0.000000e+00> : vector<1x8xf32>
      %106 = tpu.matmul %105, %0, %cst_43 {dimension_numbers = #tpu.dot_dimension_numbers<[1], [1], [0], [0], [0, 0, 1, 0], [], []>} : vector<1x32xbf16>, vector<8x32xbf16>, vector<1x8xf32> -> vector<1x8xf32>
      %c0_44 = arith.constant 0 : index
      %c0_45 = arith.constant 0 : index
      %107 = vector.load %arg13[%c0_44, %c0_45] : memref<1x8xf32, #tpu.memory_space<vmem>>, vector<1x8xf32>
      tpu.vector_store %arg13[%c0_44, %c0_45], %106 {strides = array<i32>} : memref<1x8xf32, #tpu.memory_space<vmem>>, vector<1x8xf32>,
      %c0_46 = arith.constant 0 : index
      %c0_47 = arith.constant 0 : index
      %108 = vector.load %arg4[%c0_46, %c0_47] : memref<1x32xbf16, #tpu.memory_space<vmem>>, vector<1x32xbf16>
      %cst_48 = arith.constant dense<0.000000e+00> : vector<1x16xf32>
      %109 = tpu.matmul %108, %1, %cst_48 {dimension_numbers = #tpu.dot_dimension_numbers<[1], [1], [0], [0], [0, 0, 1, 0], [], []>} : vector<1x32xbf16>, vector<16x32xbf16>, vector<1x16xf32> -> vector<1x16xf32>
      %c0_49 = arith.constant 0 : index
      %c0_50 = arith.constant 0 : index
      %110 = vector.load %arg14[%c0_49, %c0_50] : memref<1x16xf32, #tpu.memory_space<vmem>>, vector<1x16xf32>
      tpu.vector_store %arg14[%c0_49, %c0_50], %109 {strides = array<i32>} : memref<1x16xf32, #tpu.memory_space<vmem>>, vector<1x16xf32>,
      %c0_51 = arith.constant 0 : index
      %c0_52 = arith.constant 0 : index
      %111 = vector.load %arg5[%c0_51, %c0_52] : memref<32x1xbf16, #tpu.memory_space<vmem>>, vector<32x1xbf16>
      %cst_53 = arith.constant dense<0.000000e+00> : vector<8x1xf32>
      %112 = tpu.matmul %0, %111, %cst_53 {dimension_numbers = #tpu.dot_dimension_numbers<[1], [0], [0], [1], [0, 0, 1, 1], [], []>} : vector<8x32xbf16>, vector<32x1xbf16>, vector<8x1xf32> -> vector<8x1xf32>
      %c0_54 = arith.constant 0 : index
      %c0_55 = arith.constant 0 : index
      %113 = vector.load %arg8[%c0_54, %c0_55] : memref<1x1xf32, #tpu.memory_space<vmem>>, vector<1x1xf32>
      %114 = vector.broadcast %113 : vector<1x1xf32> to vector<8x1xf32>
      %115 = arith.addf %112, %114 : vector<8x1xf32>
      %c0_56 = arith.constant 0 : index
      %c0_57 = arith.constant 0 : index
      %116 = vector.load %arg15[%c0_56, %c0_57] : memref<8x1xf32, #tpu.memory_space<vmem>>, vector<8x1xf32>
      tpu.vector_store %arg15[%c0_56, %c0_57], %115 {strides = array<i32>} : memref<8x1xf32, #tpu.memory_space<vmem>>, vector<8x1xf32>,
      %c0_58 = arith.constant 0 : index
      %c0_59 = arith.constant 0 : index
      %117 = vector.load %arg6[%c0_58, %c0_59] : memref<32x1xbf16, #tpu.memory_space<vmem>>, vector<32x1xbf16>
      %cst_60 = arith.constant dense<0.000000e+00> : vector<16x1xf32>
      %118 = tpu.matmul %1, %117, %cst_60 {dimension_numbers = #tpu.dot_dimension_numbers<[1], [0], [0], [1], [0, 0, 1, 1], [], []>} : vector<16x32xbf16>, vector<32x1xbf16>, vector<16x1xf32> -> vector<16x1xf32>
      %c0_61 = arith.constant 0 : index
      %c0_62 = arith.constant 0 : index
      %119 = vector.load %arg7[%c0_61, %c0_62] : memref<1x1xf32, #tpu.memory_space<vmem>>, vector<1x1xf32>
      %120 = vector.broadcast %119 : vector<1x1xf32> to vector<16x1xf32>
      %121 = arith.addf %118, %120 : vector<16x1xf32>
      %c0_63 = arith.constant 0 : index
      %c0_64 = arith.constant 0 : index
      %122 = vector.load %arg16[%c0_63, %c0_64] : memref<16x1xf32, #tpu.memory_space<vmem>>, vector<16x1xf32>
      tpu.vector_store %arg16[%c0_63, %c0_64], %121 {strides = array<i32>} : memref<16x1xf32, #tpu.memory_space<vmem>>, vector<16x1xf32>,
    } else {
    }
    %5 = arith.index_cast %arg0 : i32 to index
    %c0_4 = arith.constant 0 : index
    %6 = vector.load %arg13[%5, %c0_4] : memref<1x8xf32, #tpu.memory_space<vmem>>, vector<1x8xf32>
    %7 = arith.index_cast %arg0 : i32 to index
    %c0_5 = arith.constant 0 : index
    %8 = vector.load %arg14[%7, %c0_5] : memref<1x16xf32, #tpu.memory_space<vmem>>, vector<1x16xf32>
    %9 = tpu.iota {dimensions = array<i32: 1>} : vector<1x1xi32>
    %10 = vector.broadcast %arg0 : i32 to vector<1x1xi32>
    %11 = arith.cmpi eq, %9, %10 : vector<1x1xi32>
    %c0_6 = arith.constant 0 : index
    %c0_7 = arith.constant 0 : index
    %12 = vector.load %arg15[%c0_6, %c0_7] : memref<8x1xf32, #tpu.memory_space<vmem>>, vector<8x1xf32>
    %cst = arith.constant 0.000000e+00 : f32
    %13 = vector.shape_cast %11 : vector<1x1xi1> to vector<1x1xi1>
    %14 = vector.broadcast %13 : vector<1x1xi1> to vector<8x1xi1>
    %15 = vector.broadcast %cst : f32 to vector<8x1xf32>
    %16 = arith.select %14, %12, %15 : vector<8x1xi1>, vector<8x1xf32>
    %cst_8 = arith.constant dense<0.000000e+00> : vector<8xf32>
    %17 = vector.multi_reduction <add>, %16, %cst_8 [1] : vector<8x1xf32> to vector<8xf32>
    %18 = vector.shape_cast %17 : vector<8xf32> to vector<8x1xf32>
    %c0_9 = arith.constant 0 : index
    %c0_10 = arith.constant 0 : index
    %19 = vector.load %arg16[%c0_9, %c0_10] : memref<16x1xf32, #tpu.memory_space<vmem>>, vector<16x1xf32>
    %cst_11 = arith.constant 0.000000e+00 : f32
    %20 = vector.shape_cast %11 : vector<1x1xi1> to vector<1x1xi1>
    %21 = vector.broadcast %20 : vector<1x1xi1> to vector<16x1xi1>
    %22 = vector.broadcast %cst_11 : f32 to vector<16x1xf32>
    %23 = arith.select %21, %19, %22 : vector<16x1xi1>, vector<16x1xf32>
    %cst_12 = arith.constant dense<0.000000e+00> : vector<16xf32>
    %24 = vector.multi_reduction <add>, %23, %cst_12 [1] : vector<16x1xf32> to vector<16xf32>
    %25 = vector.shape_cast %24 : vector<16xf32> to vector<16x1xf32>
    %26 = vector.broadcast %25 : vector<16x1xf32> to vector<16x8xf32>
    %27 = vector.broadcast %6 : vector<1x8xf32> to vector<16x8xf32>
    %28 = arith.addf %26, %27 : vector<16x8xf32>
    %cst_13 = arith.constant 0.000000e+00 : f32
    %29 = vector.broadcast %cst_13 : f32 to vector<16x8xf32>
    %30 = arith.cmpf ogt, %28, %29 : vector<16x8xf32>
    %cst_14 = arith.constant 0.00999999977 : f32
    %31 = vector.broadcast %cst_14 : f32 to vector<16x8xf32>
    %32 = arith.mulf %31, %28 : vector<16x8xf32>
    %33 = arith.select %30, %28, %32 : vector<16x8xi1>, vector<16x8xf32>
    %cst_15 = arith.constant dense<0xFF800000> : vector<16xf32>
    %34 = vector.multi_reduction <maximumf>, %33, %cst_15 [1] : vector<16x8xf32> to vector<16xf32>
    %35 = vector.shape_cast %34 : vector<16xf32> to vector<16x1xf32>
    %36 = vector.broadcast %35 : vector<16x1xf32> to vector<16x8xf32>
    %37 = arith.subf %33, %36 : vector<16x8xf32>
    %38 = math.exp %37 : vector<16x8xf32>
    %cst_16 = arith.constant dense<0.000000e+00> : vector<16xf32>
    %39 = vector.multi_reduction <add>, %38, %cst_16 [1] : vector<16x8xf32> to vector<16xf32>
    %40 = vector.shape_cast %39 : vector<16xf32> to vector<16x1xf32>
    %41 = vector.broadcast %40 : vector<16x1xf32> to vector<16x8xf32>
    %42 = arith.divf %38, %41 : vector<16x8xf32>
    %43 = arith.truncf %42 : vector<16x8xf32> to vector<16x8xbf16>
    %cst_17 = arith.constant dense<0.000000e+00> : vector<16x32xf32>
    %44 = tpu.matmul %43, %0, %cst_17 {dimension_numbers = #tpu.dot_dimension_numbers<[1], [0], [0], [1], [0, 0, 1, 1], [], []>} : vector<16x8xbf16>, vector<8x32xbf16>, vector<16x32xf32> -> vector<16x32xf32>
    %45 = vector.broadcast %18 : vector<8x1xf32> to vector<8x16xf32>
    %46 = vector.broadcast %8 : vector<1x16xf32> to vector<8x16xf32>
    %47 = arith.addf %45, %46 : vector<8x16xf32>
    %cst_18 = arith.constant 0.000000e+00 : f32
    %48 = vector.broadcast %cst_18 : f32 to vector<8x16xf32>
    %49 = arith.cmpf ogt, %47, %48 : vector<8x16xf32>
    %cst_19 = arith.constant 0.00999999977 : f32
    %50 = vector.broadcast %cst_19 : f32 to vector<8x16xf32>
    %51 = arith.mulf %50, %47 : vector<8x16xf32>
    %52 = arith.select %49, %47, %51 : vector<8x16xi1>, vector<8x16xf32>
    %cst_20 = arith.constant dense<0xFF800000> : vector<8xf32>
    %53 = vector.multi_reduction <maximumf>, %52, %cst_20 [1] : vector<8x16xf32> to vector<8xf32>
    %54 = vector.shape_cast %53 : vector<8xf32> to vector<8x1xf32>
    %55 = vector.broadcast %54 : vector<8x1xf32> to vector<8x16xf32>
    %56 = arith.subf %52, %55 : vector<8x16xf32>
    %57 = math.exp %56 : vector<8x16xf32>
    %cst_21 = arith.constant dense<0.000000e+00> : vector<8xf32>
    %58 = vector.multi_reduction <add>, %57, %cst_21 [1] : vector<8x16xf32> to vector<8xf32>
    %59 = vector.shape_cast %58 : vector<8xf32> to vector<8x1xf32>
    %60 = vector.broadcast %59 : vector<8x1xf32> to vector<8x16xf32>
    %61 = arith.divf %57, %60 : vector<8x16xf32>
    %62 = arith.truncf %61 : vector<8x16xf32> to vector<8x16xbf16>
    %cst_22 = arith.constant dense<0.000000e+00> : vector<8x32xf32>
    %63 = tpu.matmul %62, %1, %cst_22 {dimension_numbers = #tpu.dot_dimension_numbers<[1], [0], [0], [1], [0, 0, 1, 1], [], []>} : vector<8x16xbf16>, vector<16x32xbf16>, vector<8x32xf32> -> vector<8x32xf32>
    %c0_23 = arith.constant 0 : index
    %c0_24 = arith.constant 0 : index
    %c0_25 = arith.constant 0 : index
    %64 = vector.load %arg9[%c0_23, %c0_24, %c0_25] : memref<1x32x128xbf16, #tpu.memory_space<vmem>>, vector<1x32x128xbf16>
    %65 = vector.shape_cast %64 : vector<1x32x128xbf16> to vector<32x128xbf16>
    %c0_26 = arith.constant 0 : index
    %c0_27 = arith.constant 0 : index
    %c0_28 = arith.constant 0 : index
    %66 = vector.load %arg10[%c0_26, %c0_27, %c0_28] : memref<1x1x128xf32, #tpu.memory_space<vmem>>, vector<1x1x128xf32>
    %67 = vector.shape_cast %66 : vector<1x1x128xf32> to vector<1x128xf32>
    %68 = arith.truncf %63 : vector<8x32xf32> to vector<8x32xbf16>
    %cst_29 = arith.constant dense<0.000000e+00> : vector<8x128xf32>
    %69 = tpu.matmul %68, %65, %cst_29 {dimension_numbers = #tpu.dot_dimension_numbers<[1], [0], [0], [1], [0, 0, 1, 1], [], []>} : vector<8x32xbf16>, vector<32x128xbf16>, vector<8x128xf32> -> vector<8x128xf32>
    %70 = vector.broadcast %67 : vector<1x128xf32> to vector<8x128xf32>
    %71 = arith.addf %69, %70 : vector<8x128xf32>
    %cst_30 = arith.constant dense<0xFF800000> : vector<8xf32>
    %72 = vector.multi_reduction <maximumf>, %71, %cst_30 [1] : vector<8x128xf32> to vector<8xf32>
    %73 = vector.shape_cast %72 : vector<8xf32> to vector<8x1xf32>
    %74 = vector.broadcast %73 : vector<8x1xf32> to vector<8x128xf32>
    %75 = arith.subf %71, %74 : vector<8x128xf32>
    %76 = math.exp %75 : vector<8x128xf32>
    %cst_31 = arith.constant dense<0.000000e+00> : vector<8xf32>
    %77 = vector.multi_reduction <add>, %76, %cst_31 [1] : vector<8x128xf32> to vector<8xf32>
    %78 = vector.shape_cast %77 : vector<8xf32> to vector<8x1xf32>
    %79 = tpu.reciprocal %78 {approx = true} : vector<8x1xf32> -> vector<8x1xf32>
    %80 = vector.broadcast %79 : vector<8x1xf32> to vector<8x128xf32>
    %81 = arith.mulf %76, %80 : vector<8x128xf32>
    %82 = arith.truncf %44 : vector<16x32xf32> to vector<16x32xbf16>
    %cst_32 = arith.constant dense<0.000000e+00> : vector<16x128xf32>
    %83 = tpu.matmul %82, %65, %cst_32 {dimension_numbers = #tpu.dot_dimension_numbers<[1], [0], [0], [1], [0, 0, 1, 1], [], []>} : vector<16x32xbf16>, vector<32x128xbf16>, vector<16x128xf32> -> vector<16x128xf32>
    %84 = vector.broadcast %67 : vector<1x128xf32> to vector<16x128xf32>
    %85 = arith.addf %83, %84 : vector<16x128xf32>
    %cst_33 = arith.constant dense<0xFF800000> : vector<16xf32>
    %86 = vector.multi_reduction <maximumf>, %85, %cst_33 [1] : vector<16x128xf32> to vector<16xf32>
    %87 = vector.shape_cast %86 : vector<16xf32> to vector<16x1xf32>
    %88 = vector.broadcast %87 : vector<16x1xf32> to vector<16x128xf32>
    %89 = arith.subf %85, %88 : vector<16x128xf32>
    %90 = math.exp %89 : vector<16x128xf32>
    %cst_34 = arith.constant dense<0.000000e+00> : vector<16xf32>
    %91 = vector.multi_reduction <add>, %90, %cst_34 [1] : vector<16x128xf32> to vector<16xf32>
    %92 = vector.shape_cast %91 : vector<16xf32> to vector<16x1xf32>
    %93 = tpu.reciprocal %92 {approx = true} : vector<16x1xf32> -> vector<16x1xf32>
    %94 = vector.broadcast %93 : vector<16x1xf32> to vector<16x128xf32>
    %95 = arith.mulf %90, %94 : vector<16x128xf32>
    %c0_i32_35 = arith.constant 0 : i32
    %96 = arith.cmpi eq, %arg0, %c0_i32_35 : i32
    %97 = arith.extui %96 : i1 to i32
    %c0_i32_36 = arith.constant 0 : i32
    %98 = arith.cmpi ne, %97, %c0_i32_36 : i32
    scf.if %98 {
      %c0_41 = arith.constant 0 : index
      %c0_42 = arith.constant 0 : index
      %105 = vector.load %arg11[%c0_41, %c0_42] : memref<8x128xf32, #tpu.memory_space<vmem>>, vector<8x128xf32>
      tpu.vector_store %arg11[%c0_41, %c0_42], %81 {strides = array<i32>} : memref<8x128xf32, #tpu.memory_space<vmem>>, vector<8x128xf32>,
      %c0_43 = arith.constant 0 : index
      %c0_44 = arith.constant 0 : index
      %106 = vector.load %arg12[%c0_43, %c0_44] : memref<16x128xf32, #tpu.memory_space<vmem>>, vector<16x128xf32>
      tpu.vector_store %arg12[%c0_43, %c0_44], %95 {strides = array<i32>} : memref<16x128xf32, #tpu.memory_space<vmem>>, vector<16x128xf32>,
    } else {
    }
    %c0_i32_37 = arith.constant 0 : i32
    %99 = arith.cmpi sgt, %arg0, %c0_i32_37 : i32
    %100 = arith.extui %99 : i1 to i32
    %c0_i32_38 = arith.constant 0 : i32
    %101 = arith.cmpi ne, %100, %c0_i32_38 : i32
    scf.if %101 {
      %c0_41 = arith.constant 0 : index
      %c0_42 = arith.constant 0 : index
      %105 = vector.load %arg11[%c0_41, %c0_42] : memref<8x128xf32, #tpu.memory_space<vmem>>, vector<8x128xf32>
      %106 = arith.addf %105, %81 : vector<8x128xf32>
      %c0_43 = arith.constant 0 : index
      %c0_44 = arith.constant 0 : index
      %107 = vector.load %arg11[%c0_43, %c0_44] : memref<8x128xf32, #tpu.memory_space<vmem>>, vector<8x128xf32>
      tpu.vector_store %arg11[%c0_43, %c0_44], %106 {strides = array<i32>} : memref<8x128xf32, #tpu.memory_space<vmem>>, vector<8x128xf32>,
      %c0_45 = arith.constant 0 : index
      %c0_46 = arith.constant 0 : index
      %108 = vector.load %arg12[%c0_45, %c0_46] : memref<16x128xf32, #tpu.memory_space<vmem>>, vector<16x128xf32>
      %109 = arith.addf %108, %95 : vector<16x128xf32>
      %c0_47 = arith.constant 0 : index
      %c0_48 = arith.constant 0 : index
      %110 = vector.load %arg12[%c0_47, %c0_48] : memref<16x128xf32, #tpu.memory_space<vmem>>, vector<16x128xf32>
      tpu.vector_store %arg12[%c0_47, %c0_48], %109 {strides = array<i32>} : memref<16x128xf32, #tpu.memory_space<vmem>>, vector<16x128xf32>,
    } else {
    }
    %c0_i32_39 = arith.constant 0 : i32
    %102 = arith.cmpi eq, %arg0, %c0_i32_39 : i32
    %103 = arith.extui %102 : i1 to i32
    %c0_i32_40 = arith.constant 0 : i32
    %104 = arith.cmpi ne, %103, %c0_i32_40 : i32
    scf.if %104 {
      %c0_41 = arith.constant 0 : index
      %c0_42 = arith.constant 0 : index
      %105 = vector.load %arg11[%c0_41, %c0_42] : memref<8x128xf32, #tpu.memory_space<vmem>>, vector<8x128xf32>
      %cst_43 = arith.constant 1.000000e+00 : f32
      %106 = vector.broadcast %cst_43 : f32 to vector<8x128xf32>
      %107 = arith.mulf %105, %106 : vector<8x128xf32>
      %c0_44 = arith.constant 0 : index
      %c0_45 = arith.constant 0 : index
      %108 = vector.load %arg12[%c0_44, %c0_45] : memref<16x128xf32, #tpu.memory_space<vmem>>, vector<16x128xf32>
      %cst_46 = arith.constant 1.000000e+00 : f32
      %109 = vector.broadcast %cst_46 : f32 to vector<16x128xf32>
      %110 = arith.mulf %108, %109 : vector<16x128xf32>
      %c0_47 = arith.constant 0 : index
      %c0_48 = arith.constant 0 : index
      %111 = vector.load %arg11[%c0_47, %c0_48] : memref<8x128xf32, #tpu.memory_space<vmem>>, vector<8x128xf32>
      tpu.vector_store %arg11[%c0_47, %c0_48], %107 {strides = array<i32>} : memref<8x128xf32, #tpu.memory_space<vmem>>, vector<8x128xf32>,
      %c0_49 = arith.constant 0 : index
      %c0_50 = arith.constant 0 : index
      %112 = vector.load %arg12[%c0_49, %c0_50] : memref<16x128xf32, #tpu.memory_space<vmem>>, vector<16x128xf32>
      tpu.vector_store %arg12[%c0_49, %c0_50], %110 {strides = array<i32>} : memref<16x128xf32, #tpu.memory_space<vmem>>, vector<16x128xf32>,
    } else {
    }
    return
  }
  func.func @transform_0(%arg0: i32) -> (i32, i32) {
    %c0_i32 = arith.constant 0 : i32
    %c0_i32_0 = arith.constant 0 : i32
    %c0_i32_1 = arith.constant 0 : i32
    return %c0_i32, %c0_i32_0 : i32, i32
  }
  func.func @transform_1(%arg0: i32) -> (i32, i32) {
    %c0_i32 = arith.constant 0 : i32
    %c0_i32_0 = arith.constant 0 : i32
    %c0_i32_1 = arith.constant 0 : i32
    return %c0_i32, %c0_i32_0 : i32, i32
  }
  func.func @transform_2(%arg0: i32) -> (i32, i32) {
    %c0_i32 = arith.constant 0 : i32
    %c0_i32_0 = arith.constant 0 : i32
    %c0_i32_1 = arith.constant 0 : i32
    return %c0_i32, %c0_i32_0 : i32, i32
  }
  func.func @transform_3(%arg0: i32) -> (i32, i32) {
    %c0_i32 = arith.constant 0 : i32
    %c0_i32_0 = arith.constant 0 : i32
    %c0_i32_1 = arith.constant 0 : i32
    return %c0_i32, %c0_i32_0 : i32, i32
  }
  func.func @transform_4(%arg0: i32) -> (i32, i32) {
    %c0_i32 = arith.constant 0 : i32
    %c0_i32_0 = arith.constant 0 : i32
    %c0_i32_1 = arith.constant 0 : i32
    return %c0_i32, %c0_i32_0 : i32, i32
  }
  func.func @transform_5(%arg0: i32) -> (i32, i32) {
    %c0_i32 = arith.constant 0 : i32
    %c0_i32_0 = arith.constant 0 : i32
    %c0_i32_1 = arith.constant 0 : i32
    return %c0_i32, %c0_i32_0 : i32, i32
  }
  func.func @transform_6(%arg0: i32) -> (i32, i32) {
    %c0_i32 = arith.constant 0 : i32
    %c0_i32_0 = arith.constant 0 : i32
    %c0_i32_1 = arith.constant 0 : i32
    return %c0_i32, %c0_i32_0 : i32, i32
  }
  func.func @transform_7(%arg0: i32) -> (i32, i32) {
    %c0_i32 = arith.constant 0 : i32
    %c0_i32_0 = arith.constant 0 : i32
    %c0_i32_1 = arith.constant 0 : i32
    return %c0_i32, %c0_i32_0 : i32, i32
  }
  func.func @transform_8(%arg0: i32) -> (i32, i32, i32) {
    %c0_i32 = arith.constant 0 : i32
    %c0_i32_0 = arith.constant 0 : i32
    %c0_i32_1 = arith.constant 0 : i32
    return %arg0, %c0_i32, %c0_i32_0 : i32, i32, i32
  }
  func.func @transform_9(%arg0: i32) -> (i32, i32, i32) {
    %c0_i32 = arith.constant 0 : i32
    %c0_i32_0 = arith.constant 0 : i32
    %c0_i32_1 = arith.constant 0 : i32
    return %arg0, %c0_i32, %c0_i32_0 : i32, i32, i32
  }
  func.func @transform_10(%arg0: i32) -> (i32, i32) {
    %c0_i32 = arith.constant 0 : i32
    %c0_i32_0 = arith.constant 0 : i32
    %c0_i32_1 = arith.constant 0 : i32
    return %c0_i32, %c0_i32_0 : i32, i32
  }
  func.func @transform_11(%arg0: i32) -> (i32, i32) {
    %c0_i32 = arith.constant 0 : i32
    %c0_i32_0 = arith.constant 0 : i32
    %c0_i32_1 = arith.constant 0 : i32
    return %c0_i32, %c0_i32_0 : i32, i32
  }
}

</mosaic_0001>

<bundles_post_ra>
// kernel: gat_forward.2
= control target key start
LH: loop header
LB: loop body
LE: loop exit
PB: predicated region body
PF: predicated region fallthrough
CT: control target
= control target key end

     0   :  { %s1282_s17 = smov 0   ;;  %s1439_s0 = inlined_call_operand.vmem [shape: bf16[8,32], index: 0, kind: input, shape index: {}]   ;;  %s1440_s1 = inlined_call_operand.vmem [shape: bf16[16,32], index: 1, kind: input, shape index: {}]   ;;  %s1441_s2 = inlined_call_operand.vmem [shape: bf16[2,32], index: 2, kind: input, shape index: {}]   ;;  %s1442_s3 = inlined_call_operand.vmem [shape: bf16[2,32], index: 3, kind: input, shape index: {}]   ;;  %s1443_s4 = inlined_call_operand.vmem [shape: bf16[32,2], index: 4, kind: input, shape index: {}]   ;;  %s1444_s5 = inlined_call_operand.vmem [shape: bf16[32,2], index: 5, kind: input, shape index: {}]   ;;  %s1445_s6 = inlined_call_operand.vmem [shape: f32[1,2], index: 6, kind: input, shape index: {}]   ;;  %s1446_s7 = inlined_call_operand.vmem [shape: f32[1,2], index: 7, kind: input, shape index: {}]   ;;  %s1447_s8 = inlined_call_operand.vmem [shape: bf16[2,32,128], index: 8, kind: input, shape index: {}]   ;;  %s1448_s9 = inlined_call_operand.vmem [shape: f32[2,1,128], index: 9, kind: input, shape index: {}]   ;;  %s1449_s10 = inlined_call_operand.vmem [shape: f32[8,128], index: 10, kind: output, shape index: {0}]   ;;  %s1450_s11 = inlined_call_operand.vmem [shape: f32[16,128], index: 11, kind: output, shape index: {1}]  }
   0x1 LB: > { %s1288_s18 = sadd.s32 4294967295, %s1216_s17   ;;  %p1042_p0 = scmp.ge.s32.totalorder %s1216_s17, 1  ;;  %s1216_s17 = sphi %s1282_s17, %s22_s17  }
   0x2   : > { %p338_p1 = scmp.lt.s32.totalorder %s1216_s17, 3 }
   0x4   : > { %p339_p2 = pnand %p1042_p0, %p338_p1 }
   0x5   : > { %p376_p3 = scmp.lt.s32.totalorder (!%p339_p2), %s1288_s18, 1  ;;  %v1296_v0 = vld [vmem:[%s1439_s0] sm:$0xf] (!%p339_p2)  ;;  %v1306_v2 = vld [vmem:[%s1440_s1 + $0x4] sm:$0xf] (!%p339_p2)  ;;  %p1045_p4 = scmp.ne.s32.totalorder (!%p339_p2), %s1288_s18, 0 }
   0x6   : > { %342 = sbr.rel (%p339_p2) target bundleno = 1506 (0x5e2), region = 60  ;;  %v1301_v1 = vld [vmem:[%s1440_s1] sm:$0xf] (!%p339_p2) }
   0xd   : > { %s1309_s25 = scalar_select %p376_p3, %s1288_s18, 1 }
   0xe   : > { %391 = sbr.rel (%p1045_p4) target bundleno = 249 (0xf9), region = 64  ;;  %vm393_vm0 = vcmask (!%p1045_p4), 261120   ;;  %v1047_v3 = vcombine.low (!%p1045_p4), %v1301_v1, %v1306_v2  ;;  %v1218_v4 = vmov (!%p1045_p4), 0.0   ;;  %vm1219_vm1 = vmmov (!%p1045_p4), 0   ;;  %v392_v7 = vld [vmem:[%s1441_s2] sm:$0x1] (!%p1045_p4) }
   0xf   : > { %s1077_s26 = sshll.u32 %s1309_s25, 4  ;;  %s383_s29 = scalar_lea.vmem %s1448_s9, %s1309_s25  ;;  %1106 = vmatprep.subr.bf16.mxu0 (!%p1045_p4), %v1218_v4  ;;  %1112 = vmatprep.subr.bf16.mxu1 (!%p1045_p4), %v1218_v4  ;;  %v398_v5 = vsel (!%p1045_p4), %vm393_vm0, %v1296_v0, 0  ;;  %v1174_v8 = vld [vmem:[%s1443_s4] sm:$0xff] (!%p1045_p4)   ;;  %v1176_v11 = vld [vmem:[%s1443_s4 + $0x8] sm:$0xff] (!%p1045_p4)   ;;  %vm440_vm2 = vcmask (!%p1045_p4), 58368   ;;  %vm494_vm3 = vcmask (!%p1045_p4), 123904  }
  0x10   : > { %s1319_s13 = scalar_lea.vmem %s1447_s8, %s1077_s26  ;;  %1107 = vmatpush3.bf16.xpose.msra.mxu0 (!%p1045_p4), %v398_v5  ;;  %v452_v6 = vsel (!%p1045_p4), %vm393_vm0, %v1047_v3, 0  ;;  %1108 = vmatprep.mubr.msk.bf16.mxu0 (!%p1045_p4), %vm1219_vm1, %v1218_v4  ;;  %v442_v9 = vld [vmem:[%s1442_s3] sm:$0x1] (!%p1045_p4)  ;;  %v1177_v12 = vld [vmem:[%s1444_s5 + $0x8] sm:$0xff] (!%p1045_p4)   ;;  %vm559_vm4 = vcmask (!%p1045_p4), 15360  }
  0x11   : > { %1113 = vmatpush3.bf16.xpose.msra.mxu1 (!%p1045_p4), %v452_v6  ;;  %1114 = vmatprep.mubr.msk.bf16.mxu1 (!%p1045_p4), %vm1219_vm1, %v1218_v4  ;;  %v1175_v10 = vld [vmem:[%s1444_s5] sm:$0xff] (!%p1045_p4)  }
  0x12   : > { %1118 = vmatprep.subr.bf16.mxu0 (!%p1045_p4), %v1218_v4  ;;  %1126 = vmatprep.subr.bf16.mxu1 (!%p1045_p4), %v1218_v4  ;;  %v1049_v21 = vld [vmem:[%s1446_s7] ss:$0 sm:$0xff] (!%p1045_p4) }
  0x13   : > { %v1053_v22 = vld [vmem:[%s1445_s6] ss:$0 sm:$0xff] (!%p1045_p4) }
  0x17   : > { %1109 = vmatmul.mubr.msk.bf16.vlgmr.msra.gmra.mrb[0].mxu0 %vm393_vm0, %v392_v7 }
  0x18   : > { %1115 = vmatmul.mubr.msk.bf16.vlgmr.msra.gmra.mrb[0].mxu1 %vm393_vm0, %v442_v9  ;;  %1119 = vmatpush3.bf16.msra.mxu0 %v1174_v8 }
  0x19   : > { %1127 = vmatpush3.bf16.msra.mxu1 %v1175_v10  ;;  %1120 = vmatprep.subr.bf16.mxu0 %v1218_v4 }
  0x1a   : > { %1128 = vmatprep.subr.bf16.mxu1 %v1218_v4  ;;  %1122 = vmatprep.mubr.msk.bf16.mxu0 %vm1219_vm1, %v1218_v4 }
  0x1b   : > { %1130 = vmatprep.mubr.msk.bf16.mxu1 %vm1219_vm1, %v1218_v4 }
  0x1c   : > { %1121 = vmatpush3.bf16.msra.mxu0 %v1176_v11 }
  0x1d   : > { %1129 = vmatpush3.bf16.msra.mxu1 %v1177_v12 }
  0x1f   : > { %1123 = vmatmul.mubr.msk.bf16.vlgmr.msra.gmra.mrb[4].mxu0 %vm393_vm0, %v1296_v0 }
  0x20   : > { %1131 = vmatmul.mubr.msk.bf16.vlgmr.msra.gmra.mrb[4].mxu1 %vm393_vm0, %v1047_v3 }
  0xea   : > { %v434_v13 = vpop.f32.mrb[0].mxu0 }
  0xeb   : > { %441 = vst.msk [vmem:[#allocation2] sm:$0x3] %vm440_vm2, %v434_v13  ;;  %v488_v14 = vpop.f32.mrb[0].mxu1  ;;  %v1110_v15 = vpop.f32.mrb[1].mxu0 }
  0xec   : > { %495 = vst.msk [vmem:[#allocation3] sm:$0x3] %vm494_vm3, %v488_v14  ;;  %v1116_v16 = vpop.f32.mrb[1].mxu1  ;;  %v437_v17 = vpop.f32.mrb[2].mxu0 }
  0xed   : > { %v491_v18 = vpop.f32.mrb[2].mxu1  ;;  %v1111_v19 = vpop.f32.mrb[3].mxu0 }
  0xee   : > { %v1117_v20 = vpop.f32.mrb[3].mxu1 }
  0xf2   : > { %v553_v23 = vpop.f32.mrb[4].mxu0 }
  0xf3   : > { %v554_v24 = vadd.f32 %v1049_v21, %v553_v23  ;;  %v618_v25 = vpop.f32.mrb[4].mxu1  ;;  %v1124_v26 = vpop.f32.mrb[5].mxu0 }
  0xf4   : > { %v619_v27 = vadd.f32 %v1053_v22, %v618_v25  ;;  %v1132_v28 = vpop.f32.mrb[5].mxu1  ;;  %v556_v29 = vpop.f32.mrb[6].mxu0 }
  0xf5   : > { %560 = vst.msk [vmem:[#allocation4] sm:$0xff] %vm559_vm4, %v554_v24  ;;  %v621_v30 = vpop.f32.mrb[6].mxu1  ;;  %v1125_v31 = vpop.f32.mrb[7].mxu0 }
  0xf6   : > { %625 = vst.msk [vmem:[#allocation5] sm:$0xff] %vm559_vm4, %v619_v27  ;;  %v622_v32 = vadd.f32 %v1053_v22, %v621_v30  ;;  %v1133_v33 = vpop.f32.mrb[7].mxu1 }
  0xf8   : > { %626 = vst.msk [vmem:[#allocation5 + $0x8] sm:$0xff] %vm559_vm4, %v622_v32 }
  0xf9 PF: > { %v631_v34 = vlaneseq  ;;  %v633_v36 = vstv %s1288_s18  ;;  %vm639_vm5 = vcmask 15360   ;;  %s1078_s16 = scalar_lea.vmem [#allocation2], %s1216_s17  ;;  %s1082_s19 = scalar_lea.vmem [#allocation3], %s1216_s17  ;;  %vm665_vm8 = vcmask 64512   ;;  %v1178_v26 = vld [vmem:[%s1319_s13] sm:$0xff]   ;;  %v1179_v29 = vld [vmem:[%s1319_s13 + $0x8] sm:$0xff]  }
  0xfa   : > { %v1081_v46 = vld [vmem:[%s1078_s16 - $0x1] ss:$0 sm:$0xff]  ;;  %vm745_vm11 = vcmask 130048   ;;  %vm692_vm12 = vcmask 1043456   ;;  %v1062_v17 = vcombine.low %v1301_v1, %v1306_v2  ;;  %v1220_v18 = vmov 0.0  }
  0xfb   : > { %v632_v37 = vand.u32 127, %v631_v34  ;;  %v1085_v47 = vld [vmem:[%s1082_s19 - $0x1] ss:$0 sm:$0xff]  ;;  %1134 = vmatprep.subr.bf16.mxu0 %v1220_v18  ;;  %1140 = vmatprep.subr.bf16.mxu1 %v1220_v18  ;;  %v694_v19 = vsel %vm692_vm12, %v1296_v0, 0  ;;  %vm1221_vm13 = vmmov 0   ;;  %vm831_vm14 = vcmask 261120  }
  0xfc   : > { %v635_v38 = vld [vmem:[#allocation4] sm:$0xff]  ;;  %1135 = vmatpush3.bf16.msra.mxu0 %v694_v19  ;;  %1141 = vmatpush3.bf16.msra.mxu1 %v1062_v17 }
  0xfd   : > { %v643_v35 = vld [vmem:[#allocation5] sm:$0xff]  ;;  %vm634_vm6 = vcmp.eq.s32.totalorder %v632_v37, %v633_v36  ;;  %1136 = vmatprep.mubr.msk.bf16.mxu0 %vm1221_vm13, %v1220_v18  ;;  %1142 = vmatprep.mubr.msk.bf16.mxu1 %vm1221_vm13, %v1220_v18 }
  0xfe   : > { %v645_v40 = vsel %vm634_vm6, %v643_v35, 0.0  ;;  %v638_v41 = vsel %vm634_vm6, %v635_v38, 0.0  ;;  %1146 = vmatprep.subr.bf16.mxu0 %v1220_v18  ;;  %1154 = vmatprep.subr.bf16.mxu1 %v1220_v18 }
  0xff   : > { %v644_v39 = vld [vmem:[#allocation5 + $0x8] sm:$0xff]  ;;  %v647_v43 = vsel %vm639_vm5, %v645_v40, 0.0  ;;  %v640_v44 = vsel %vm639_vm5, %v638_v41, 0.0  ;;  %v1064_v40 = vld [vmem:[%s383_s29] ss:$0 sm:$0xff] }
 0x100   : > { %v646_v42 = vsel %vm634_vm6, %v644_v39, 0.0  ;;  %648 = vadd.xlane.f32.xlu0 %v647_v43  ;;  %641 = vadd.xlane.f32.xlu1 %v640_v44 }
 0x101   : > { %v650_v45 = vsel %vm639_vm5, %v646_v42, 0.0 }
 0x104   : > { %651 = vadd.xlane.f32.xlu0 %v650_v45 }
 0x18d   : > { %v649_v48 = vpop.xlane.xlu0 %648  ;;  %v642_v49 = vpop.xlane.xlu1 %641 }
 0x18e   : > { %v657_v50 = vadd.f32 %v1081_v46, %v649_v48  ;;  %v741_v51 = vadd.f32 %v1085_v47, %v642_v49 }
 0x190   : > { %v661_v52 = vmul.f32 0.01, %v657_v50  ;;  %v743_v53 = vmul.f32 0.01, %v741_v51  ;;  %vm659_vm7 = vcmp.gt.f32.partialorder %v657_v50, 0.0  ;;  %vm742_vm9 = vcmp.gt.f32.partialorder %v741_v51, 0.0 }
 0x191   : > { %v652_v54 = vpop.xlane.xlu0 %651 }
 0x192   : > { %v658_v55 = vadd.f32 %v1081_v46, %v652_v54  ;;  %v663_v56 = vsel %vm659_vm7, %v657_v50, %v661_v52  ;;  %v744_v59 = vsel %vm742_vm9, %v741_v51, %v743_v53 }
 0x193   : > { %v666_v57 = vsel %vm665_vm8, %v663_v56, -inf  ;;  %v746_v62 = vsel %vm745_vm11, %v744_v59, -inf }
 0x194   : > { %v662_v58 = vmul.f32 0.01, %v658_v55  ;;  %667 = vmax.xlane.f32.xlu1 %v666_v57  ;;  %vm660_vm10 = vcmp.gt.f32.partialorder %v658_v55, 0.0 }
 0x196   : > { %v664_v60 = vsel %vm660_vm10, %v658_v55, %v662_v58 }
 0x197   : > { %v669_v61 = vsel %vm665_vm8, %v664_v60, -inf }
 0x198   : > { %670 = vmax.xlane.f32.xlu0 %v669_v61  ;;  %747 = vmax.xlane.f32.xlu1 %v746_v62 }
 0x221   : > { %v668_v63 = vpop.xlane.xlu1 %667 }
 0x222   : > { %v672_v3 = vsub.f32 %v663_v56, %v668_v63 }
 0x224   : > { %v674_v4 = vmul.f32 1.442695, %v672_v3 }
 0x225   : > { %v671_v5 = vpop.xlane.xlu0 %670  ;;  %v748_v6 = vpop.xlane.xlu1 %747 }
 0x226   : > { %1180 = vpow2.f32 %v674_v4  ;;  %v673_v7 = vsub.f32 %v664_v60, %v671_v5  ;;  %v749_v8 = vsub.f32 %v744_v59, %v748_v6 }
 0x228   : > { %v676_v9 = vmul.f32 1.442695, %v673_v7  ;;  %v750_v10 = vmul.f32 1.442695, %v749_v8 }
 0x22a   : > { %1182 = vpow2.f32 %v676_v9 }
 0x22b   : > { %1184 = vpow2.f32 %v750_v10 }
 0x230   : > { %v1181_v11 = vpop.eup %1180 }
 0x231   : > { %v678_v12 = vsel %vm665_vm8, %v1181_v11, 0.0 }
 0x232   : > { %679 = vadd.xlane.f32.xlu0 %v678_v12 }
 0x234   : > { %v1183_v13 = vpop.eup %1182 }
 0x235   : > { %v1185_v14 = vpop.eup %1184  ;;  %v681_v15 = vsel %vm665_vm8, %v1183_v13, 0.0 }
 0x236   : > { %682 = vadd.xlane.f32.xlu1 %v681_v15  ;;  %v752_v16 = vsel %vm745_vm11, %v1185_v14, 0.0 }
 0x237   : > { %753 = vadd.xlane.f32.xlu0 %v752_v16 }
 0x2bf   : > { %v680_v20 = vpop.xlane.xlu0 %679 }
 0x2c0   : > { %1186 = vrcp.f32 %v680_v20 }
 0x2c3   : > { %v683_v21 = vpop.xlane.xlu1 %682 }
 0x2c4   : > { %v754_v1 = vpop.xlane.xlu0 %753  ;;  %1188 = vrcp.f32 %v683_v21 }
 0x2c5   : > { %1190 = vrcp.f32 %v754_v1 }
 0x2ca   : > { %v1187_v2 = vpop.eup %1186 }
 0x2cb   : > { %v685_v23 = vmul.f32 %v1187_v2, %v1181_v11 }
 0x2ce   : > { %v1189_v22 = vpop.eup %1188 }
 0x2cf   : > { %v1191_v0 = vpop.eup %1190  ;;  %v687_v24 = vmul.f32 %v1189_v22, %v1183_v13 }
 0x2d0   : > { %v756_v25 = vmul.f32 %v1191_v0, %v1185_v14 }
 0x2d1   : > { %v688_v27 = vpack.c.bf16 %v687_v24, %v685_v23 }
 0x2d2   : > { %v757_v28 = vpack.c.bf16 %v756_v25, %v756_v25 }
 0x2d3   : > { %1137 = vmatmul.mubr.msk.bf16.vlgmr.msra.gmra.mrb[0].mxu0 %vm665_vm8, %v688_v27 }
 0x2d4   : > { %1143 = vmatmul.mubr.msk.bf16.vlgmr.msra.gmra.mrb[0].mxu1 %vm745_vm11, %v757_v28  ;;  %1147 = vmatpush3.bf16.msra.mxu0 %v1178_v26 }
 0x2d5   : > { %1155 = vmatpush3.bf16.msra.mxu1 %v1178_v26  ;;  %1148 = vmatprep.subr.bf16.mxu0 %v1220_v18 }
 0x2d6   : > { %1156 = vmatprep.subr.bf16.mxu1 %v1220_v18  ;;  %1150 = vmatprep.mubr.msk.bf16.mxu0 %vm1221_vm13, %v1220_v18 }
 0x2d7   : > { %1158 = vmatprep.mubr.msk.bf16.mxu1 %vm1221_vm13, %v1220_v18 }
 0x2d8   : > { %1149 = vmatpush3.bf16.msra.mxu0 %v1179_v29 }
 0x2d9   : > { %1157 = vmatpush3.bf16.msra.mxu1 %v1179_v29 }
 0x3a6   : > { %v730_v30 = vpop.f32.mrb[0].mxu0 }
 0x3a7   : > { %v801_v31 = vpop.f32.mrb[0].mxu1  ;;  %v1138_v32 = vpop.f32.mrb[1].mxu0 }
 0x3a8   : > { %v812_v33 = vpack.c.bf16 %v801_v31, %v801_v31  ;;  %v1144_v34 = vpop.f32.mrb[1].mxu1  ;;  %v733_v35 = vpop.f32.mrb[2].mxu0 }
 0x3a9   : > { %v884_v36 = vpack.c.bf16 %v733_v35, %v730_v30  ;;  %v804_v37 = vpop.f32.mrb[2].mxu1  ;;  %v1139_v38 = vpop.f32.mrb[3].mxu0 }
 0x3aa   : > { %v1145_v39 = vpop.f32.mrb[3].mxu1  ;;  %1151 = vmatmul.mubr.msk.bf16.vlgmr.msra.gmra.mrb[4].mxu0 %vm831_vm14, %v812_v33 }
 0x3ab   : > { %1159 = vmatmul.mubr.msk.bf16.vlgmr.msra.gmra.mrb[4].mxu1 %vm831_vm14, %v884_v36 }
 0x47d   : > { %v869_v41 = vpop.f32.mrb[4].mxu0 }
 0x47e   : > { %v870_v42 = vadd.f32 %v1064_v40, %v869_v41  ;;  %v1152_v43 = vpop.f32.mrb[5].mxu0  ;;  %v922_v44 = vpop.f32.mrb[4].mxu1 }
 0x47f   : > { %v872_v45 = vpop.f32.mrb[6].mxu0  ;;  %v923_v46 = vadd.f32 %v1064_v40, %v922_v44  ;;  %v1160_v47 = vpop.f32.mrb[5].mxu1 }
 0x480   : > { %875 = vmax.xlane.f32.xlu1 %v870_v42  ;;  %v1153_v48 = vpop.f32.mrb[7].mxu0  ;;  %v925_v49 = vpop.f32.mrb[6].mxu1 }
 0x481   : > { %v926_v50 = vadd.f32 %v1064_v40, %v925_v49  ;;  %929 = vmax.xlane.f32.xlu0 %v923_v46  ;;  %v1161_v51 = vpop.f32.mrb[7].mxu1 }
 0x484   : > { %931 = vmax.xlane.f32.xlu1 %v926_v50 }
 0x50d   : > { %v876_v52 = vpop.xlane.xlu1 %875 }
 0x50e   : > { %v877_v53 = vsub.f32 %v870_v42, %v876_v52  ;;  %v930_v54 = vpop.xlane.xlu0 %929 }
 0x50f   : > { %v933_v55 = vsub.f32 %v923_v46, %v930_v54 }
 0x510   : > { %v878_v56 = vmul.f32 1.442695, %v877_v53 }
 0x511   : > { %v935_v57 = vmul.f32 1.442695, %v933_v55  ;;  %v932_v58 = vpop.xlane.xlu1 %931 }
 0x512   : > { %1192 = vpow2.f32 %v878_v56  ;;  %v934_v59 = vsub.f32 %v926_v50, %v932_v58 }
 0x513   : > { %1194 = vpow2.f32 %v935_v57 }
 0x514   : > { %v937_v60 = vmul.f32 1.442695, %v934_v59 }
 0x516   : > { %1196 = vpow2.f32 %v937_v60 }
 0x51c   : > { %v1193_v61 = vpop.eup %1192 }
 0x51d   : > { %v1195_v62 = vpop.eup %1194  ;;  %880 = vadd.xlane.f32.xlu0 %v1193_v61 }
 0x51e   : > { %939 = vadd.xlane.f32.xlu1 %v1195_v62 }
 0x520   : > { %v1197_v63 = vpop.eup %1196 }
 0x521   : > { %941 = vadd.xlane.f32.xlu0 %v1197_v63 }
 0x5aa   : > { %v881_v3 = vpop.xlane.xlu0 %880 }
 0x5ab   : > { %1198 = vrcp.f32 %v881_v3  ;;  %v940_v4 = vpop.xlane.xlu1 %939 }
 0x5ac   : > { %1200 = vrcp.f32 %v940_v4 }
 0x5ae   : > { %v942_v5 = vpop.xlane.xlu0 %941 }
 0x5af   : > { %1202 = vrcp.f32 %v942_v5 }
 0x5b4   : > { %949 = sbr.rel (%p1045_p4) target bundleno = 1469 (0x5bd), region = 68 }
 0x5b5   : > { %v1199_v6 = vpop.eup %1198 }
 0x5b6   : > { %v1201_v7 = vpop.eup %1200  ;;  %v883_v8 = vmul.f32 %v1199_v6, %v1193_v61 }
 0x5b7   : > { %v945_v9 = vmul.f32 %v1201_v7, %v1195_v62 }
 0x5b8   : > { %950 = vst [vmem:[%s1449_s10] sm:$0xff] (!%p1045_p4), %v883_v8 }
 0x5b9   : > { %v1203_v10 = vpop.eup %1202  ;;  %951 = vst [vmem:[%s1450_s11] sm:$0xff] (!%p1045_p4), %v945_v9 }
 0x5ba   : > { %v946_v11 = vmul.f32 %v1203_v10, %v1197_v63 }
 0x5bc   : > { %952 = vst [vmem:[%s1450_s11 + $0x8] sm:$0xff] %v946_v11 }
 0x5bd PF: > { %p1070_p5 = scmp.le.s32.totalorder %s1288_s18, 0 }
 0x5bf   : > { %956 = sbr.rel (%p1070_p5) target bundleno = 1479 (0x5c7), region = 72 }
 0x5c1   : > { %v957_v12 = vld [vmem:[%s1449_s10] sm:$0xff] (!%p1070_p5) }
 0x5c2   : > { %v960_v13 = vld [vmem:[%s1450_s11] sm:$0xff] (!%p1070_p5)  ;;  %v958_v15 = vadd.f32 (!%p1070_p5), %v957_v12, %v883_v8 }
 0x5c3   : > { %v961_v14 = vld [vmem:[%s1450_s11 + $0x8] sm:$0xff] (!%p1070_p5)  ;;  %v962_v16 = vadd.f32 (!%p1070_p5), %v960_v13, %v945_v9 }
 0x5c4   : > { %v963_v17 = vadd.f32 (!%p1070_p5), %v961_v14, %v946_v11  ;;  %959 = vst [vmem:[%s1449_s10] sm:$0xff] (!%p1070_p5), %v958_v15 }
 0x5c5   : > { %964 = vst [vmem:[%s1450_s11] sm:$0xff] (!%p1070_p5), %v962_v16 }
 0x5c6   : > { %965 = vst [vmem:[%s1450_s11 + $0x8] sm:$0xff] %v963_v17 }
 0x5c7 PF: > { %p1071_p6 = scmp.ne.s32.totalorder %s1288_s18, 1 }
 0x5c9   : > { %969 = sbr.rel (%p1071_p6) target bundleno = 1506 (0x5e2), region = 76 }
 0x5cc   : > { %v970_v18 = vld [vmem:[%s1449_s10] sm:$0xff] (!%p1071_p6) }
 0x5cd   : > { %v972_v19 = vld [vmem:[%s1450_s11] sm:$0xff] (!%p1071_p6)  ;;  %v973_v20 = vld [vmem:[%s1450_s11 + $0x8] sm:$0xff] (!%p1071_p6)  ;;  %v971_v21 = vmul.f32 (!%p1071_p6), 0.5, %v970_v18 }
 0x5ce   : > { %v974_v1 = vmul.f32 (!%p1071_p6), 0.5, %v972_v19  ;;  %v975_v2 = vmul.f32 (!%p1071_p6), 0.5, %v973_v20 }
 0x5cf   : > { %v977_v22 = vmul.f32 (!%p1071_p6), 1.442695, %v971_v21  ;;  %vm976_vm15 = vcmp.gt.f32.partialorder (!%p1071_p6), %v971_v21, 0.0 }
 0x5d0   : > { %v983_v0 = vmul.f32 1.442695, %v974_v1  ;;  %v985_v23 = vmul.f32 1.442695, %v975_v2  ;;  %vm981_vm0 = vcmp.gt.f32.partialorder %v974_v1, 0.0  ;;  %vm982_vm1 = vcmp.gt.f32.partialorder %v975_v2, 0.0 }
 0x5d1   : > { %1204 = vpow2.f32 %v977_v22 }
 0x5d2   : > { %1206 = vpow2.f32 %v983_v0 }
 0x5d3   : > { %1208 = vpow2.f32 %v985_v23 }
 0x5db   : > { %v1205_v24 = vpop.eup %1204 }
 0x5dc   : > { %v1207_v25 = vpop.eup %1206  ;;  %v1072_v26 = vadd.f32 -1.0, %v1205_v24 }
 0x5dd   : > { %v1209_v27 = vpop.eup %1208  ;;  %v1073_v28 = vadd.f32 -1.0, %v1207_v25 }
 0x5de   : > { %v980_v29 = vsel %vm976_vm15, %v971_v21, %v1072_v26  ;;  %v1074_v30 = vadd.f32 -1.0, %v1209_v27 }
 0x5df   : > { %991 = vst [vmem:[%s1449_s10] sm:$0xff] %v980_v29  ;;  %v989_v31 = vsel %vm981_vm0, %v974_v1, %v1073_v28 }
 0x5e0   : > { %992 = vst [vmem:[%s1450_s11] sm:$0xff] %v989_v31  ;;  %v990_v32 = vsel %vm982_vm1, %v975_v2, %v1074_v30 }
 0x5e1   : > { %993 = vst [vmem:[%s1450_s11 + $0x8] sm:$0xff] %v990_v32 }
 0x5e2 PF: > { %s22_s17 = sadd.s32 1, %s1216_s17  }
 0x5e3   : > { %p19_p7 = scmp.ge.s32.totalorder %s22_s17, 4  }
 0x5e5   :  { %21 = sbr.rel (!%p19_p7) target bundleno = 1 (0x1), region = 115 }

// kernel: gat_forward.3
= control target key start
LH: loop header
LB: loop body
LE: loop exit
PB: predicated region body
PF: predicated region fallthrough
CT: control target
= control target key end

     0   :  { %s1048_s0 = inlined_call_operand.vmem [shape: bf16[8,32], index: 0, kind: input, shape index: {}]   ;;  %s1049_s1 = inlined_call_operand.vmem [shape: bf16[16,32], index: 1, kind: input, shape index: {}]   ;;  %s1050_s2 = inlined_call_operand.vmem [shape: bf16[1,32], index: 2, kind: input, shape index: {}]   ;;  %s1051_s3 = inlined_call_operand.vmem [shape: bf16[1,32], index: 3, kind: input, shape index: {}]   ;;  %s1052_s4 = inlined_call_operand.vmem [shape: bf16[32,1], index: 4, kind: input, shape index: {}]   ;;  %s1053_s5 = inlined_call_operand.vmem [shape: bf16[32,1], index: 5, kind: input, shape index: {}]   ;;  %s1054_s6 = inlined_call_operand.<no memory space> [shape: f32[1,1], index: 6, kind: input, shape index: {}]   ;;  %s1055_s8 = inlined_call_operand.vmem [shape: bf16[1,32,128], index: 8, kind: input, shape index: {}]   ;;  %s1056_s9 = inlined_call_operand.vmem [shape: f32[1,1,128], index: 9, kind: input, shape index: {}]   ;;  %s1057_s10 = inlined_call_operand.hbm [shape: f32[8,128], index: 10, kind: output, shape index: {0}]   ;;  %s1058_s11 = inlined_call_operand.hbm [shape: f32[16,128], index: 11, kind: output, shape index: {1}]   ;;  %s1059_s7 = inlined_call_operand.<no memory space> [shape: f32[1,1], index: 7, kind: input, shape index: {}]  }
   0x1   :  { %v17_v0 = vstv %s1054_s6  ;;  %v19_v1 = vstv %s1059_s7 }
   0x2   :  { %18 = vst [vmem:[#allocation6] sm:$0x1] %v17_v0  ;;  %20 = vst [vmem:[#allocation7] sm:$0x1] %v19_v1 }
   0x3   :  { %21 = vsyncpa [#allocation9], 0  ;;  %v935_v2 = vld [vmem:[%s1048_s0] sm:$0xf]  ;;  %vm52_vm0 = vcmask 261120   ;;  %v859_v3 = vmov 0.0  }
   0x4   :  { %715 = vmatprep.subr.bf16.mxu0 %v859_v3  ;;  %v57_v4 = vsel %vm52_vm0, %v935_v2, 0  ;;  %721 = vmatprep.subr.bf16.mxu1 %v859_v3  ;;  %v780_v5 = vld [vmem:[%s1049_s1] sm:$0xff]   ;;  %vm860_vm1 = vmmov 0  }
   0x5   :  { %716 = vmatpush3.bf16.xpose.msra.mxu0 %v57_v4  ;;  %717 = vmatprep.mubr.msk.bf16.mxu0 %vm860_vm1, %v859_v3  ;;  %v111_v6 = vsel %vm52_vm0, %v780_v5, 0  ;;  %v781_v7 = vld [vmem:[%s1052_s4] sm:$0xff]  }
   0x6   :  { %727 = vmatprep.subr.bf16.mxu0 %v859_v3  ;;  %723 = vmatprep.mubr.msk.bf16.mxu1 %vm860_vm1, %v859_v3  ;;  %v51_v8 = vld [vmem:[%s1050_s2] sm:$0x1] }
   0x7   :  { %722 = vmatpush3.bf16.xpose.msra.mxu1 %v111_v6 }
   0x8   :  { %735 = vmatprep.subr.bf16.mxu1 %v859_v3 }
   0x9   :  { %22 = vsyncpa [#allocation11], 0  ;;  %v101_v9 = vld [vmem:[%s1051_s3] sm:$0x1]  ;;  %v783_v11 = vld [vmem:[%s1052_s4 + $0x8] sm:$0xff]   ;;  %v861_v13 = vmov 0   ;;  %v288_v25 = vlaneseq }
   0xa   :  { %v782_v10 = vld [vmem:[%s1053_s5] sm:$0xff]   ;;  %v784_v12 = vld [vmem:[%s1053_s5 + $0x8] sm:$0xff]   ;;  %779 = vset.pattern.permute.xlu1 %v861_v13  ;;  %778 = vset.pattern.permute.xlu0 %v861_v13  ;;  %vm99_vm2 = vcmask 57344   ;;  %vm153_vm3 = vcmask 122880   ;;  %v677_v22 = vld [vmem:[#allocation7] ss:$0 sm:$0xff] }
   0xb   :  { %vm218_vm4 = vcmask 7168   ;;  %v681_v24 = vld [vmem:[#allocation6] ss:$0 sm:$0xff]  ;;  %v289_v34 = vand.u32 127, %v288_v25  ;;  %vm327_vm7 = vcmask 64512   ;;  %vm414_vm10 = vcmask 130048  }
   0xc   :  { %718 = vmatmul.mubr.msk.bf16.vlgmr.msra.gmra.mrb[0].mxu0 %vm52_vm0, %v51_v8  ;;  %vm354_vm11 = vcmask 1043456   ;;  %v786_v25 = vld [vmem:[%s1055_s8 + $0x8] sm:$0xff]   ;;  %s863_s16 = smov [#allocation10]  }
   0xd   :  { %728 = vmatpush3.bf16.msra.mxu0 %v781_v7  ;;  %731 = vmatprep.mubr.msk.bf16.mxu0 %vm860_vm1, %v859_v3  ;;  %vm291_vm5 = vcmp.eq.s32.totalorder %v289_v34, 0  ;;  %v356_v13 = vsel %vm354_vm11, %v935_v2, 0  ;;  %s659_s17 = sshll.u32 %s863_s16, 4  ;;  %s1017_s17 = int_to_ptr.vmem [resolvable:$true] %s659_s17 }
   0xe   :  { %724 = vmatmul.mubr.msk.bf16.vlgmr.msra.gmra.mrb[0].mxu1 %vm52_vm0, %v101_v9  ;;  %729 = vmatprep.subr.bf16.mxu0 %v859_v3 }
   0xf   :  { %736 = vmatpush3.bf16.msra.mxu1 %v782_v10  ;;  %739 = vmatprep.mubr.msk.bf16.mxu1 %vm860_vm1, %v859_v3 }
  0x10   :  { %737 = vmatprep.subr.bf16.mxu1 %v859_v3 }
  0x11   :  { %730 = vmatpush3.bf16.msra.mxu0 %v783_v11 }
  0x12   :  { %743 = vmatprep.subr.bf16.mxu0 %v859_v3 }
  0x13   :  { %738 = vmatpush3.bf16.msra.mxu1 %v784_v12 }
  0x14   :  { %732 = vmatmul.mubr.msk.bf16.vlgmr.msra.gmra.mrb[4].mxu0 %vm52_vm0, %v935_v2  ;;  %749 = vmatprep.subr.bf16.mxu1 %v859_v3 }
  0x15   :  { %745 = vmatprep.mubr.msk.bf16.mxu0 %vm860_vm1, %v859_v3  ;;  %744 = vmatpush3.bf16.msra.mxu0 %v356_v13 }
  0x16   :  { %740 = vmatmul.mubr.msk.bf16.vlgmr.msra.gmra.mrb[4].mxu1 %vm52_vm0, %v780_v5  ;;  %755 = vmatprep.subr.bf16.mxu0 %v859_v3 }
  0x17   :  { %750 = vmatpush3.bf16.msra.mxu1 %v780_v5  ;;  %751 = vmatprep.mubr.msk.bf16.mxu1 %vm860_vm1, %v859_v3 }
  0x18   :  { %763 = vmatprep.subr.bf16.mxu1 %v859_v3 }
  0xdf   :  { %v93_v14 = vpop.f32.mrb[0].mxu0 }
  0xe0   :  { %100 = vst.msk [vmem:[#allocation2] sm:$0x1] %vm99_vm2, %v93_v14  ;;  %v719_v15 = vpop.f32.mrb[1].mxu0 }
  0xe1   :  { %v147_v16 = vpop.f32.mrb[0].mxu1  ;;  %v96_v17 = vpop.f32.mrb[2].mxu0 }
  0xe2   :  { %154 = vst.msk [vmem:[#allocation3] sm:$0x1] %vm153_vm3, %v147_v16  ;;  %v725_v18 = vpop.f32.mrb[1].mxu1  ;;  %v720_v19 = vpop.f32.mrb[3].mxu0 }
  0xe3   :  { %v150_v20 = vpop.f32.mrb[2].mxu1 }
  0xe4   :  { %v726_v21 = vpop.f32.mrb[3].mxu1 }
  0xe7   :  { %v212_v23 = vpop.f32.mrb[4].mxu0  ;;  %v685_v45 = vld [vmem:[#allocation2] ss:$0 sm:$0xff] }
  0xe8   :  { %v213_v26 = vadd.f32 %v677_v22, %v212_v23  ;;  %v733_v27 = vpop.f32.mrb[5].mxu0  ;;  %v785_v23 = vld [vmem:[%s1055_s8] sm:$0xff]   ;;  %s862_s8 = smov [#allocation8]  }
  0xe9   :  { %v277_v28 = vpop.f32.mrb[4].mxu1  ;;  %v215_v29 = vpop.f32.mrb[6].mxu0  ;;  %v687_v47 = vld [vmem:[#allocation3] ss:$0 sm:$0xff] }
  0xea   :  { %219 = vst.msk [vmem:[#allocation4] sm:$0xff] %vm218_vm4, %v213_v26  ;;  %v278_v30 = vadd.f32 %v681_v24, %v277_v28  ;;  %v741_v31 = vpop.f32.mrb[5].mxu1  ;;  %v734_v32 = vpop.f32.mrb[7].mxu0 }
  0xeb   :  { %v280_v33 = vpop.f32.mrb[6].mxu1 }
  0xec   :  { %284 = vst.msk [vmem:[#allocation5] sm:$0xff] %vm218_vm4, %v278_v30  ;;  %v281_v35 = vadd.f32 %v681_v24, %v280_v33  ;;  %v742_v36 = vpop.f32.mrb[7].mxu1 }
  0xee   :  { %285 = vst.msk [vmem:[#allocation5 + $0x8] sm:$0xff] %vm218_vm4, %v281_v35 }
  0xf1   :  { %v292_v37 = vld [vmem:[#allocation4] sm:$0xff] }
  0xf2   :  { %v295_v38 = vsel %vm291_vm5, %v292_v37, 0.0 }
  0xf3   :  { %401 = vperm.xlu1 %779, %v295_v38   ;;  %v297_v39 = vld [vmem:[#allocation5] sm:$0xff] }
  0xf4   :  { %v299_v40 = vsel %vm291_vm5, %v297_v39, 0.0 }
  0xf5   :  { %305 = vperm.xlu0 %778, %v299_v40   ;;  %v298_v41 = vld [vmem:[#allocation5 + $0x8] sm:$0xff] }
  0xf6   :  { %v300_v42 = vsel %vm291_vm5, %v298_v41, 0.0 }
  0xf9   :  { %310 = vperm.xlu0 %778, %v300_v42  }
 0x172   :  { %v402_v43 = vpop.permute.xlu1 %401 }
 0x173   :  { %v410_v48 = vadd.f32 %v687_v47, %v402_v43 }
 0x174   :  { %v306_v44 = vpop.permute.xlu0 %305 }
 0x175   :  { %v319_v46 = vadd.f32 %v685_v45, %v306_v44  ;;  %v412_v54 = vmul.f32 0.01, %v410_v48  ;;  %vm411_vm9 = vcmp.gt.f32.partialorder %v410_v48, 0.0 }
 0x177   :  { %v323_v49 = vmul.f32 0.01, %v319_v46  ;;  %vm321_vm6 = vcmp.gt.f32.partialorder %v319_v46, 0.0  ;;  %v413_v58 = vsel %vm411_vm9, %v410_v48, %v412_v54 }
 0x178   :  { %v311_v50 = vpop.permute.xlu0 %310  ;;  %v415_v59 = vsel %vm414_vm10, %v413_v58, -inf }
 0x179   :  { %v320_v51 = vadd.f32 %v685_v45, %v311_v50  ;;  %v325_v52 = vsel %vm321_vm6, %v319_v46, %v323_v49 }
 0x17a   :  { %v328_v53 = vsel %vm327_vm7, %v325_v52, -inf }
 0x17b   :  { %v324_v55 = vmul.f32 0.01, %v320_v51  ;;  %329 = vmax.xlane.f32.xlu1 %v328_v53  ;;  %vm322_vm8 = vcmp.gt.f32.partialorder %v320_v51, 0.0 }
 0x17d   :  { %v326_v56 = vsel %vm322_vm8, %v320_v51, %v324_v55 }
 0x17e   :  { %v331_v57 = vsel %vm327_vm7, %v326_v56, -inf }
 0x17f   :  { %332 = vmax.xlane.f32.xlu0 %v331_v57 }
 0x183   :  { %416 = vmax.xlane.f32.xlu0 %v415_v59 }
 0x208   :  { %v330_v60 = vpop.xlane.xlu1 %329 }
 0x209   :  { %v334_v61 = vsub.f32 %v325_v52, %v330_v60 }
 0x20b   :  { %v336_v62 = vmul.f32 1.442695, %v334_v61 }
 0x20c   :  { %v333_v63 = vpop.xlane.xlu0 %332 }
 0x20d   :  { %787 = vpow2.f32 %v336_v62  ;;  %v335_v0 = vsub.f32 %v326_v56, %v333_v63 }
 0x20f   :  { %v338_v1 = vmul.f32 1.442695, %v335_v0 }
 0x210   :  { %v417_v4 = vpop.xlane.xlu0 %416 }
 0x211   :  { %789 = vpow2.f32 %v338_v1  ;;  %v418_v5 = vsub.f32 %v413_v58, %v417_v4 }
 0x213   :  { %v419_v6 = vmul.f32 1.442695, %v418_v5 }
 0x215   :  { %791 = vpow2.f32 %v419_v6 }
 0x217   :  { %v788_v7 = vpop.eup %787 }
 0x218   :  { %v340_v8 = vsel %vm327_vm7, %v788_v7, 0.0 }
 0x219   :  { %341 = vadd.xlane.f32.xlu1 %v340_v8 }
 0x21b   :  { %v790_v9 = vpop.eup %789 }
 0x21c   :  { %v343_v10 = vsel %vm327_vm7, %v790_v9, 0.0 }
 0x21d   :  { %344 = vadd.xlane.f32.xlu0 %v343_v10 }
 0x21f   :  { %v792_v11 = vpop.eup %791 }
 0x220   :  { %v421_v12 = vsel %vm414_vm10, %v792_v11, 0.0 }
 0x221   :  { %422 = vadd.xlane.f32.xlu1 %v421_v12 }
 0x2a6   :  { %v342_v14 = vpop.xlane.xlu1 %341 }
 0x2a7   :  { %793 = vrcp.f32 %v342_v14 }
 0x2aa   :  { %v345_v15 = vpop.xlane.xlu0 %344 }
 0x2ab   :  { %795 = vrcp.f32 %v345_v15 }
 0x2ae   :  { %v423_v16 = vpop.xlane.xlu1 %422 }
 0x2af   :  { %797 = vrcp.f32 %v423_v16 }
 0x2b1   :  { %v794_v17 = vpop.eup %793 }
 0x2b2   :  { %v347_v19 = vmul.f32 %v794_v17, %v788_v7 }
 0x2b5   :  { %v796_v18 = vpop.eup %795 }
 0x2b6   :  { %v349_v20 = vmul.f32 %v796_v18, %v790_v9 }
 0x2b8   :  { %v350_v21 = vpack.c.bf16 %v349_v20, %v347_v19 }
 0x2b9   :  { %v798_v22 = vpop.eup %797 }
 0x2ba   :  { %v425_v2 = vmul.f32 %v798_v22, %v792_v11  ;;  %746 = vmatmul.mubr.msk.bf16.vlgmr.msra.gmra.mrb[8].mxu0 %vm327_vm7, %v350_v21 }
 0x2bb   :  { %756 = vmatpush3.bf16.msra.mxu0 %v785_v23  ;;  %759 = vmatprep.mubr.msk.bf16.mxu0 %vm860_vm1, %v859_v3 }
 0x2bc   :  { %v426_v24 = vpack.c.bf16 %v425_v2, %v425_v2  ;;  %757 = vmatprep.subr.bf16.mxu0 %v859_v3 }
 0x2be   :  { %752 = vmatmul.mubr.msk.bf16.vlgmr.msra.gmra.mrb[8].mxu1 %vm414_vm10, %v426_v24 }
 0x2bf   :  { %764 = vmatpush3.bf16.msra.mxu1 %v785_v23  ;;  %767 = vmatprep.mubr.msk.bf16.mxu1 %vm860_vm1, %v859_v3 }
 0x2c0   :  { %765 = vmatprep.subr.bf16.mxu1 %v859_v3  ;;  %758 = vmatpush3.bf16.msra.mxu0 %v786_v25  ;;  %v690_v3 = vld [vmem:[%s1056_s9] ss:$0 sm:$0xff]  ;;  %s650_s9 = sshll.u32 %s862_s8, 4  ;;  %s651_s9 = int_to_ptr.vmem [resolvable:$true] %s650_s9 }
 0x2c1   :  { %s811_s18 = scalar_lea.vmem %s651_s9, 128  ;;  %p816_p1 = scmp.lt.s32.totalorder %s651_s9, %s651_s9 }
 0x2c2   :  { %p812_p0 = scmp.ne.s32.totalorder %s651_s9, %s811_s18  ;;  %p817_p2 = scmp.lt.s32.totalorder %s811_s18, %s811_s18 }
 0x2c3   :  { %766 = vmatpush3.bf16.msra.mxu1 %v786_v25 }
 0x2c4   :  { %p818_p3 = por %p817_p2, %p816_p1 }
 0x2c6   :  { %p819_p4 = pnand %p818_p3, %p812_p0 }
 0x38d   :  { %v392_v26 = vpop.f32.mrb[8].mxu0 }
 0x38e   :  { %v747_v27 = vpop.f32.mrb[9].mxu0 }
 0x38f   :  { %v395_v28 = vpop.f32.mrb[10].mxu0 }
 0x390   :  { %v553_v29 = vpack.c.bf16 %v395_v28, %v392_v26  ;;  %v748_v30 = vpop.f32.mrb[11].mxu0 }
 0x391   :  { %v470_v31 = vpop.f32.mrb[8].mxu1 }
 0x392   :  { %v481_v32 = vpack.c.bf16 %v470_v31, %v470_v31  ;;  %v753_v33 = vpop.f32.mrb[9].mxu1  ;;  %768 = vmatmul.mubr.msk.bf16.vlgmr.msra.gmra.mrb[12].mxu1 %vm52_vm0, %v553_v29 }
 0x393   :  { %v473_v34 = vpop.f32.mrb[10].mxu1 }
 0x394   :  { %v754_v35 = vpop.f32.mrb[11].mxu1  ;;  %760 = vmatmul.mubr.msk.bf16.vlgmr.msra.gmra.mrb[12].mxu0 %vm52_vm0, %v481_v32 }
 0x465   :  { %v591_v36 = vpop.f32.mrb[12].mxu1 }
 0x466   :  { %v592_v37 = vadd.f32 %v690_v3, %v591_v36  ;;  %v769_v38 = vpop.f32.mrb[13].mxu1 }
 0x467   :  { %v538_v39 = vpop.f32.mrb[12].mxu0  ;;  %v594_v40 = vpop.f32.mrb[14].mxu1 }
 0x468   :  { %v539_v41 = vadd.f32 %v690_v3, %v538_v39  ;;  %598 = vmax.xlane.f32.xlu1 %v592_v37  ;;  %v761_v42 = vpop.f32.mrb[13].mxu0  ;;  %v770_v43 = vpop.f32.mrb[15].mxu1  ;;  %v595_v46 = vadd.f32 %v690_v3, %v594_v40 }
 0x469   :  { %v541_v44 = vpop.f32.mrb[14].mxu0 }
 0x46a   :  { %544 = vmax.xlane.f32.xlu0 %v539_v41  ;;  %v762_v45 = vpop.f32.mrb[15].mxu0 }
 0x46e   :  { %600 = vmax.xlane.f32.xlu0 %v595_v46 }
 0x4f5   :  { %v599_v47 = vpop.xlane.xlu1 %598 }
 0x4f6   :  { %v602_v48 = vsub.f32 %v592_v37, %v599_v47 }
 0x4f7   :  { %v545_v49 = vpop.xlane.xlu0 %544 }
 0x4f8   :  { %v604_v50 = vmul.f32 1.442695, %v602_v48  ;;  %v546_v51 = vsub.f32 %v539_v41, %v545_v49 }
 0x4fa   :  { %799 = vpow2.f32 %v604_v50  ;;  %v547_v52 = vmul.f32 1.442695, %v546_v51 }
 0x4fb   :  { %v601_v53 = vpop.xlane.xlu0 %600 }
 0x4fc   :  { %801 = vpow2.f32 %v547_v52  ;;  %v603_v54 = vsub.f32 %v595_v46, %v601_v53 }
 0x4fe   :  { %v606_v55 = vmul.f32 1.442695, %v603_v54 }
 0x500   :  { %803 = vpow2.f32 %v606_v55 }
 0x504   :  { %v800_v56 = vpop.eup %799 }
 0x505   :  { %608 = vadd.xlane.f32.xlu0 %v800_v56 }
 0x506   :  { %v802_v57 = vpop.eup %801 }
 0x507   :  { %549 = vadd.xlane.f32.xlu1 %v802_v57 }
 0x50a   :  { %v804_v58 = vpop.eup %803 }
 0x50b   :  { %610 = vadd.xlane.f32.xlu1 %v804_v58 }
 0x592   :  { %v609_v59 = vpop.xlane.xlu0 %608 }
 0x593   :  { %805 = vrcp.f32 %v609_v59 }
 0x594   :  { %v550_v60 = vpop.xlane.xlu1 %549 }
 0x595   :  { %807 = vrcp.f32 %v550_v60 }
 0x598   :  { %v611_v61 = vpop.xlane.xlu1 %610 }
 0x599   :  { %809 = vrcp.f32 %v611_v61 }
 0x59d   :  { %v806_v62 = vpop.eup %805 }
 0x59e   :  { %v614_v63 = vmul.f32 %v806_v62, %v800_v56 }
 0x59f   :  { %v808_v0 = vpop.eup %807 }
 0x5a0   :  { %v552_v1 = vmul.f32 %v808_v0, %v802_v57  ;;  %642 = vst [vmem:[#allocation10] sm:$0xff] %v614_v63 }
 0x5a2   :  { %641 = vst [vmem:[#allocation8] sm:$0xff] %v552_v1 }
 0x5a3   :  { %v810_v4 = vpop.eup %809 }
 0x5a4   :  { %822 = shalt.err (!%p819_p4)
}
 0x5a5   :  { %s823_s21 = scalar_lea.hbm %s1057_s10, 128 }
 0x5a6   :  { %p824_p5 = scmp.ne.s32.totalorder %s1057_s10, %s823_s21  ;;  %p827_p6 = scmp.lt.u32.totalorder %s823_s21, %s1057_s10 }
 0x5a8   :  { %p829_p7 = pnand %p827_p6, %p824_p5 }
 0x5aa   :  { %832 = shalt.err (!%p829_p7)
}
 0x5ab   :  { %653 = dma.vmem_to_hbm [thread:$0]  %s651_s9, 128, %s1057_s10, [#allocation9]   ;;  %v615_v5 = vmul.f32 %v810_v4, %v804_v58 }
 0x5ac   :  { %s833_s24 = scalar_lea.vmem %s1017_s17, 256  ;;  %p838_p9 = scmp.lt.s32.totalorder %s1017_s17, %s1017_s17 }
 0x5ad   :  { %643 = vst [vmem:[#allocation10 + $0x8] sm:$0xff] %v615_v5  ;;  %p834_p8 = scmp.ne.s32.totalorder %s1017_s17, %s833_s24  ;;  %p839_p10 = scmp.lt.s32.totalorder %s833_s24, %s833_s24 }
 0x5af   :  { %p840_p11 = por %p839_p10, %p838_p9 }
 0x5b1   :  { %p841_p12 = pnand %p840_p11, %p834_p8 }
 0x5b3   :  { %844 = shalt.err (!%p841_p12)
}
 0x5b4   :  { %s845_s27 = scalar_lea.hbm %s1058_s11, 256 }
 0x5b5   :  { %p846_p13 = scmp.ne.s32.totalorder %s1058_s11, %s845_s27  ;;  %p849_p0 = scmp.lt.u32.totalorder %s845_s27, %s1058_s11 }
 0x5b7   :  { %p851_p1 = pnand %p849_p0, %p846_p13 }
 0x5b9   :  { %854 = shalt.err (!%p851_p1)
}
 0x5ba   :  { %s864_s2 = smov 128   ;;  %s865_s3 = smov 8  }
 0x5bb   :  { %665 = dma.vmem_to_hbm [thread:$0]  %s1017_s17, 256, %s1058_s11, [#allocation11], %s864_s2, %s864_s2, %s865_s3  }
 0x5bc   :  { %855 = dma.done.wait [#allocation9], 128  }
 0x5bd   :  { %856 = vsyncadd [#allocation9], 4294967168 }
 0x5be   :  { %857 = dma.done.wait [#allocation11], 256  }
 0x5bf   :  { %858 = vsyncadd [#allocation11], 4294967040 }
 0x5c0   :  { %672 = vsyncpa [#allocation9], 1 }
 0x5c1   :  { %673 = vsyncpa [#allocation11], 1 }

</bundles_post_ra>
